<compile_context>
chip_gen: v7x
topology: tpu7x:2x2x1
jax: 0.10.0
libtpu: 0.0.40
codegen_flags: <defaults>
</compile_context>

<pallas_src>
import math
import functools

import jax
import jax.numpy as jnp
from jax.experimental import pallas as pl
from jax.experimental.pallas import tpu as pltpu


def _round_up(x, m):
    return (x + m - 1) // m * m


# -----------------------------------------------------------------------------
# Recurrent kernel: only h_{t-1} @ W_hh + gate nonlinearities per step.
# Grid = (batch_tiles, time_chunks); h/c carried in VMEM scratch.
# -----------------------------------------------------------------------------
def _lstm_recurrent_kernel(gx_ref, whh_ref,            # inputs
                           h_all_ref, hn_ref, cn_ref,  # outputs
                           h_scr, c_scr,               # scratch
                           *, t_chunk, hidden_pad):
    tc = pl.program_id(1)

    @pl.when(tc == 0)
    def _():
        h_scr[...] = jnp.zeros_like(h_scr)
        c_scr[...] = jnp.zeros_like(c_scr)

    Hp = hidden_pad
    whh = whh_ref[...]                                   # (Hp, 4*Hp), loaded once

    def step(s, carry):
        h, c = carry
        # (TB, 4*Hp): precomputed x-part + recurrent matmul (single small GEMM).
        gates = gx_ref[s] + jnp.dot(h, whh, preferred_element_type=jnp.float32)
        # Lane-aligned gate slices (each chunk is a multiple of 128 lanes).
        i_g = jax.nn.sigmoid(gates[:, 0 * Hp:1 * Hp])
        f_g = jax.nn.sigmoid(gates[:, 1 * Hp:2 * Hp])
        g_g = jnp.tanh(gates[:, 2 * Hp:3 * Hp])
        o_g = jax.nn.sigmoid(gates[:, 3 * Hp:4 * Hp])
        c_new = f_g * c + i_g * g_g
        h_new = o_g * jnp.tanh(c_new)
        h_all_ref[s] = h_new.astype(h_all_ref.dtype)
        return h_new, c_new

    h_last, c_last = jax.lax.fori_loop(
        0, t_chunk, step, (h_scr[...], c_scr[...]), unroll=True)

    h_scr[...] = h_last
    c_scr[...] = c_last

    # Final hidden / cell state: write only on the last time chunk.
    @pl.when(tc == pl.num_programs(1) - 1)
    def _():
        hn_ref[...] = h_last.astype(hn_ref.dtype)
        cn_ref[...] = c_last.astype(cn_ref.dtype)


def cudnn_lstm_model_forward(x, params, hidden_size, *, t_chunk=16):
    """x: (T, B, nx) float32. Returns (out (T,B,ny), (hn (1,B,H), cn (1,B,H)))."""
    T, B, nx = x.shape
    H = hidden_size
    ny = params["w_out"].shape[0]

    LANE, SUBLANE = 128, 8
    H_pad = _round_up(H, LANE)

    # Batch tiling: pad to sublane tile; tile at <=128 rows per grid step.
    TB = 128
    B_pad = _round_up(B, SUBLANE)
    if B_pad <= TB:
        TB = B_pad
    else:
        B_pad = _round_up(B, TB)
    n_b = B_pad // TB

    # Time chunking: largest divisor of T not exceeding t_chunk.
    tc_len = max(1, min(t_chunk, T))
    while T % tc_len:
        tc_len -= 1
    n_tc = T // tc_len

    # ---- time-parallel GEMMs (large XLA matmuls, outside the recurrence) ----
    w_in_t = params["w_in"].T                              # (nx, H)
    w_ih_t = params["w_ih"].T                              # (H, 4H)
    w_out_t = params["w_out"].T                            # (H, ny)
    bias = (params["b_ih"] + params["b_hh"]).reshape(4, H)  # merged LSTM biases

    x0 = jax.nn.relu(jnp.einsum("tbf,fh->tbh", x, w_in_t) + params["b_in"])
    gates_x = jnp.einsum("tbh,hg->tbg", x0, w_ih_t).reshape(T, B, 4, H) + bias

    # Pad batch to B_pad and each gate chunk to H_pad (lane tile) with zeros;
    # zero-padded hidden units stay exactly 0 through the recurrence.
    gates_x = jnp.pad(gates_x,
                      ((0, 0), (0, B_pad - B), (0, 0), (0, H_pad - H)))
    gates_x = gates_x.reshape(T, B_pad, 4 * H_pad)

    # Pre-transposed, gate-chunk-padded recurrent weight: (H_pad, 4*H_pad).
    w_hh_t = params["w_hh"].T.reshape(H, 4, H)
    w_hh_t = jnp.pad(w_hh_t, ((0, H_pad - H), (0, 0), (0, H_pad - H)))
    w_hh_t = w_hh_t.reshape(H_pad, 4 * H_pad)

    kernel = functools.partial(_lstm_recurrent_kernel,
                               t_chunk=tc_len, hidden_pad=H_pad)

    grid_spec = pltpu.PrefetchScalarGridSpec(
        num_scalar_prefetch=0,
        grid=(n_b, n_tc),
        in_specs=[
            pl.BlockSpec((tc_len, TB, 4 * H_pad), lambda b, t: (t, b, 0)),  # gates_x
            pl.BlockSpec((H_pad, 4 * H_pad),      lambda b, t: (0, 0)),     # w_hh^T
        ],
        out_specs=[
            pl.BlockSpec((tc_len, TB, H_pad), lambda b, t: (t, b, 0)),      # h per step
            pl.BlockSpec((TB, H_pad),         lambda b, t: (b, 0)),         # hn
            pl.BlockSpec((TB, H_pad),         lambda b, t: (b, 0)),         # cn
        ],
        scratch_shapes=[
            pltpu.VMEM((TB, H_pad), jnp.float32),   # h carry
            pltpu.VMEM((TB, H_pad), jnp.float32),   # c carry
        ],
    )

    cost = pl.CostEstimate(
        flops=int(2 * T * B_pad * H_pad * 4 * H_pad + 10 * T * B_pad * 4 * H_pad),
        transcendentals=int(5 * T * B_pad * H_pad),
        bytes_accessed=int(4 * (T * B_pad * 4 * H_pad     # gates_x in
                                + T * B_pad * H_pad       # h_all out
                                + H_pad * 4 * H_pad       # w_hh
                                + 2 * B_pad * H_pad)),    # hn/cn
    )

    h_all, hn, cn = pl.pallas_call(
        kernel,
        grid_spec=grid_spec,
        out_shape=(
            jax.ShapeDtypeStruct((T, B_pad, H_pad), jnp.float32),
            jax.ShapeDtypeStruct((B_pad, H_pad), jnp.float32),
            jax.ShapeDtypeStruct((B_pad, H_pad), jnp.float32),
        ),
        compiler_params=pltpu.CompilerParams(
            # batch tiles are independent (megacore); time is the recurrence.
            dimension_semantics=("parallel", "arbitrary")),
        cost_estimate=cost,
    )(gates_x, w_hh_t)

    # ---- output projection as one big GEMM after the recurrence --------------
    h_real = h_all[:, :B, :H]                               # (T, B, H)
    out = jnp.einsum("tbh,ho->tbo", h_real, w_out_t) + params["b_out"]
    hn = hn[:B, :H][None]                                   # (1, B, H)
    cn = cn[:B, :H][None]
    return out, (hn, cn)


# -----------------------------------------------------------------------------
# Init + pure-JAX reference
# -----------------------------------------------------------------------------
def init_params(key, nx, ny, hidden_size):
    """Deterministic init matching the PyTorch module's uniform(-stdv, stdv) scheme."""
    H = hidden_size
    keys = jax.random.split(key, 9)
    s_in = 1.0 / math.sqrt(nx)
    s_h = 1.0 / math.sqrt(H)
    u = lambda k, shape, s: jax.random.uniform(k, shape, jnp.float32, -s, s)
    return {
        "w_in":  u(keys[0], (H, nx), s_in),
        "b_in":  u(keys[1], (1, H), s_in),
        "w_ih":  u(keys[2], (4 * H, H), s_h),
        "w_hh":  u(keys[3], (4 * H, H), s_h),
        "b_ih":  u(keys[4], (1, 4 * H), s_h),
        "b_hh":  u(keys[5], (1, 4 * H), s_h),
        "w_out": u(keys[6], (ny, H), s_h),
        "b_out": u(keys[7], (1, ny), s_h),
    }


def reference_forward(x, params, hidden_size):
    """Pure-JAX reference (lax.scan LSTM) for correctness checking."""
    H = hidden_size
    x0 = jax.nn.relu(jnp.einsum("tbf,hf->tbh", x, params["w_in"]) + params["b_in"])

    def step(carry, xt):
        h, c = carry
        gates = (xt @ params["w_ih"].T + params["b_ih"]
                 + h @ params["w_hh"].T + params["b_hh"])
        i = jax.nn.sigmoid(gates[:, :H])
        f = jax.nn.sigmoid(gates[:, H:2 * H])
        g = jnp.tanh(gates[:, 2 * H:3 * H])
        o = jax.nn.sigmoid(gates[:, 3 * H:4 * H])
        c = f * c + i * g
        h = o * jnp.tanh(c)
        return (h, c), h

    B = x.shape[1]
    h0 = jnp.zeros((B, H), jnp.float32)
    c0 = jnp.zeros((B, H), jnp.float32)
    (hT, cT), hs = jax.lax.scan(step, (h0, c0), x0)
    out = jnp.einsum("tbh,oh->tbo", hs, params["w_out"]) + params["b_out"]
    return out, (hT[None], cT[None])


if __name__ == "__main__":
    T, B, NX, H, NY = 8, 2, 4, 32, 2

    key = jax.random.PRNGKey(0)
    k_x, k_p = jax.random.split(key)
    x = jax.random.normal(k_x, (T, B, NX), jnp.float32)
    params = init_params(k_p, NX, NY, H)

    fwd = jax.jit(functools.partial(cudnn_lstm_model_forward, hidden_size=H))
    out, (hn, cn) = fwd(x, params)
    out = jax.block_until_ready(out)
    hn = jax.block_until_ready(hn)
    cn = jax.block_until_ready(cn)

    ref_out, (ref_hn, ref_cn) = reference_forward(x, params, H)
    assert out.shape == (T, B, NY)
    assert hn.shape == (1, B, H) and cn.shape == (1, B, H)
    assert jnp.allclose(out, ref_out, rtol=1e-4, atol=1e-4)
    assert jnp.allclose(hn, ref_hn, rtol=1e-4, atol=1e-4)
    assert jnp.allclose(cn, ref_cn, rtol=1e-4, atol=1e-4)

    print("KERNEL_OK")
</pallas_src>

<mosaic_0001>
module attributes {stable_mosaic.version = 11 : i64} {
  func.func @_lstm_recurrent_kernel(%arg0: i32, %arg1: i32, %arg2: memref<8x8x512xf32, #tpu.memory_space<vmem>>, %arg3: memref<128x512xf32, #tpu.memory_space<vmem>>, %arg4: memref<8x8x128xf32, #tpu.memory_space<vmem>>, %arg5: memref<8x128xf32, #tpu.memory_space<vmem>>, %arg6: memref<8x128xf32, #tpu.memory_space<vmem>>, %arg7: memref<8x128xf32, #tpu.memory_space<vmem>>, %arg8: memref<8x128xf32, #tpu.memory_space<vmem>>) attributes {dimension_semantics = [#tpu.dimension_semantics<parallel>, #tpu.dimension_semantics<arbitrary>], iteration_bounds = array<i64: 1, 1>, scalar_prefetch = 0 : i64, scratch_operands = 2 : i64, tpu.core_type = #tpu.core_type<tc>, window_params = [{transform_indices = @transform_0, window_bounds = array<i64: 8, 8, 512>}, {pipeline_mode = #tpu.pipeline_mode<synchronous>, transform_indices = @transform_1, window_bounds = array<i64: 128, 512>}, {transform_indices = @transform_2, window_bounds = array<i64: 8, 8, 128>}, {transform_indices = @transform_3, window_bounds = array<i64: 8, 128>}, {transform_indices = @transform_4, window_bounds = array<i64: 8, 128>}]} {
    %c0_i32 = arith.constant 0 : i32
    %0 = arith.cmpi eq, %arg1, %c0_i32 : i32
    %1 = arith.extui %0 : i1 to i32
    %c0_i32_0 = arith.constant 0 : i32
    %2 = arith.cmpi ne, %1, %c0_i32_0 : i32
    scf.if %2 {
      %cst_76 = arith.constant 0.000000e+00 : f32
      %283 = vector.broadcast %cst_76 : f32 to vector<8x128xf32>
      %c0_77 = arith.constant 0 : index
      %c0_78 = arith.constant 0 : index
      %284 = vector.load %arg7[%c0_77, %c0_78] : memref<8x128xf32, #tpu.memory_space<vmem>>, vector<8x128xf32>
      tpu.vector_store %arg7[%c0_77, %c0_78], %283 {strides = array<i32>} : memref<8x128xf32, #tpu.memory_space<vmem>>, vector<8x128xf32>,
      %cst_79 = arith.constant 0.000000e+00 : f32
      %285 = vector.broadcast %cst_79 : f32 to vector<8x128xf32>
      %c0_80 = arith.constant 0 : index
      %c0_81 = arith.constant 0 : index
      %286 = vector.load %arg8[%c0_80, %c0_81] : memref<8x128xf32, #tpu.memory_space<vmem>>, vector<8x128xf32>
      tpu.vector_store %arg8[%c0_80, %c0_81], %285 {strides = array<i32>} : memref<8x128xf32, #tpu.memory_space<vmem>>, vector<8x128xf32>,
    } else {
    }
    %c0 = arith.constant 0 : index
    %c0_1 = arith.constant 0 : index
    %3 = vector.load %arg3[%c0, %c0_1] : memref<128x512xf32, #tpu.memory_space<vmem>>, vector<128x512xf32>
    %c0_2 = arith.constant 0 : index
    %c0_3 = arith.constant 0 : index
    %4 = vector.load %arg7[%c0_2, %c0_3] : memref<8x128xf32, #tpu.memory_space<vmem>>, vector<8x128xf32>
    %c0_4 = arith.constant 0 : index
    %c0_5 = arith.constant 0 : index
    %5 = vector.load %arg8[%c0_4, %c0_5] : memref<8x128xf32, #tpu.memory_space<vmem>>, vector<8x128xf32>
    %c0_i32_6 = arith.constant 0 : i32
    %6 = arith.index_cast %c0_i32_6 : i32 to index
    %c0_7 = arith.constant 0 : index
    %c0_8 = arith.constant 0 : index
    %7 = vector.load %arg2[%6, %c0_7, %c0_8] : memref<8x8x512xf32, #tpu.memory_space<vmem>>, vector<1x8x512xf32>
    %8 = vector.shape_cast %7 : vector<1x8x512xf32> to vector<8x512xf32>
    %cst = arith.constant dense<0.000000e+00> : vector<8x512xf32>
    %9 = tpu.matmul %4, %3, %cst {dimension_numbers = #tpu.dot_dimension_numbers<[1], [0], [0], [1], [0, 0, 1, 1], [], []>} : vector<8x128xf32>, vector<128x512xf32>, vector<8x512xf32> -> vector<8x512xf32>
    %10 = arith.addf %8, %9 : vector<8x512xf32>
    %11 = vector.extract_strided_slice %10 {offsets = [0, 0], sizes = [8, 128], strides = [1, 1]} : vector<8x512xf32> to vector<8x128xf32>
    %12 = arith.negf %11 : vector<8x128xf32>
    %13 = math.exp %12 : vector<8x128xf32>
    %cst_9 = arith.constant 1.000000e+00 : f32
    %14 = vector.broadcast %cst_9 : f32 to vector<8x128xf32>
    %15 = arith.addf %14, %13 : vector<8x128xf32>
    %16 = arith.divf %14, %15 : vector<8x128xf32>
    %17 = vector.extract_strided_slice %10 {offsets = [0, 128], sizes = [8, 128], strides = [1, 1]} : vector<8x512xf32> to vector<8x128xf32>
    %18 = arith.negf %17 : vector<8x128xf32>
    %19 = math.exp %18 : vector<8x128xf32>
    %cst_10 = arith.constant 1.000000e+00 : f32
    %20 = vector.broadcast %cst_10 : f32 to vector<8x128xf32>
    %21 = arith.addf %20, %19 : vector<8x128xf32>
    %22 = arith.divf %20, %21 : vector<8x128xf32>
    %23 = vector.extract_strided_slice %10 {offsets = [0, 256], sizes = [8, 128], strides = [1, 1]} : vector<8x512xf32> to vector<8x128xf32>
    %24 = math.tanh %23 : vector<8x128xf32>
    %25 = vector.extract_strided_slice %10 {offsets = [0, 384], sizes = [8, 128], strides = [1, 1]} : vector<8x512xf32> to vector<8x128xf32>
    %26 = arith.negf %25 : vector<8x128xf32>
    %27 = math.exp %26 : vector<8x128xf32>
    %cst_11 = arith.constant 1.000000e+00 : f32
    %28 = vector.broadcast %cst_11 : f32 to vector<8x128xf32>
    %29 = arith.addf %28, %27 : vector<8x128xf32>
    %30 = arith.divf %28, %29 : vector<8x128xf32>
    %31 = arith.mulf %22, %5 : vector<8x128xf32>
    %32 = arith.mulf %16, %24 : vector<8x128xf32>
    %33 = arith.addf %31, %32 : vector<8x128xf32>
    %34 = math.tanh %33 : vector<8x128xf32>
    %35 = arith.mulf %30, %34 : vector<8x128xf32>
    %36 = arith.index_cast %c0_i32_6 : i32 to index
    %c0_12 = arith.constant 0 : index
    %c0_13 = arith.constant 0 : index
    %37 = vector.load %arg4[%36, %c0_12, %c0_13] : memref<8x8x128xf32, #tpu.memory_space<vmem>>, vector<1x8x128xf32>
    %38 = vector.shape_cast %37 : vector<1x8x128xf32> to vector<8x128xf32>
    %39 = vector.shape_cast %35 : vector<8x128xf32> to vector<1x8x128xf32>
    tpu.vector_store %arg4[%36, %c0_12, %c0_13], %39 {strides = array<i32>} : memref<8x8x128xf32, #tpu.memory_space<vmem>>, vector<1x8x128xf32>,
    %c1_i32 = arith.constant 1 : i32
    %40 = arith.index_cast %c1_i32 : i32 to index
    %c0_14 = arith.constant 0 : index
    %c0_15 = arith.constant 0 : index
    %41 = vector.load %arg2[%40, %c0_14, %c0_15] : memref<8x8x512xf32, #tpu.memory_space<vmem>>, vector<1x8x512xf32>
    %42 = vector.shape_cast %41 : vector<1x8x512xf32> to vector<8x512xf32>
    %cst_16 = arith.constant dense<0.000000e+00> : vector<8x512xf32>
    %43 = tpu.matmul %35, %3, %cst_16 {dimension_numbers = #tpu.dot_dimension_numbers<[1], [0], [0], [1], [0, 0, 1, 1], [], []>} : vector<8x128xf32>, vector<128x512xf32>, vector<8x512xf32> -> vector<8x512xf32>
    %44 = arith.addf %42, %43 : vector<8x512xf32>
    %45 = vector.extract_strided_slice %44 {offsets = [0, 0], sizes = [8, 128], strides = [1, 1]} : vector<8x512xf32> to vector<8x128xf32>
    %46 = arith.negf %45 : vector<8x128xf32>
    %47 = math.exp %46 : vector<8x128xf32>
    %cst_17 = arith.constant 1.000000e+00 : f32
    %48 = vector.broadcast %cst_17 : f32 to vector<8x128xf32>
    %49 = arith.addf %48, %47 : vector<8x128xf32>
    %50 = arith.divf %48, %49 : vector<8x128xf32>
    %51 = vector.extract_strided_slice %44 {offsets = [0, 128], sizes = [8, 128], strides = [1, 1]} : vector<8x512xf32> to vector<8x128xf32>
    %52 = arith.negf %51 : vector<8x128xf32>
    %53 = math.exp %52 : vector<8x128xf32>
    %cst_18 = arith.constant 1.000000e+00 : f32
    %54 = vector.broadcast %cst_18 : f32 to vector<8x128xf32>
    %55 = arith.addf %54, %53 : vector<8x128xf32>
    %56 = arith.divf %54, %55 : vector<8x128xf32>
    %57 = vector.extract_strided_slice %44 {offsets = [0, 256], sizes = [8, 128], strides = [1, 1]} : vector<8x512xf32> to vector<8x128xf32>
    %58 = math.tanh %57 : vector<8x128xf32>
    %59 = vector.extract_strided_slice %44 {offsets = [0, 384], sizes = [8, 128], strides = [1, 1]} : vector<8x512xf32> to vector<8x128xf32>
    %60 = arith.negf %59 : vector<8x128xf32>
    %61 = math.exp %60 : vector<8x128xf32>
    %cst_19 = arith.constant 1.000000e+00 : f32
    %62 = vector.broadcast %cst_19 : f32 to vector<8x128xf32>
    %63 = arith.addf %62, %61 : vector<8x128xf32>
    %64 = arith.divf %62, %63 : vector<8x128xf32>
    %65 = arith.mulf %56, %33 : vector<8x128xf32>
    %66 = arith.mulf %50, %58 : vector<8x128xf32>
    %67 = arith.addf %65, %66 : vector<8x128xf32>
    %68 = math.tanh %67 : vector<8x128xf32>
    %69 = arith.mulf %64, %68 : vector<8x128xf32>
    %70 = arith.index_cast %c1_i32 : i32 to index
    %c0_20 = arith.constant 0 : index
    %c0_21 = arith.constant 0 : index
    %71 = vector.load %arg4[%70, %c0_20, %c0_21] : memref<8x8x128xf32, #tpu.memory_space<vmem>>, vector<1x8x128xf32>
    %72 = vector.shape_cast %71 : vector<1x8x128xf32> to vector<8x128xf32>
    %73 = vector.shape_cast %69 : vector<8x128xf32> to vector<1x8x128xf32>
    tpu.vector_store %arg4[%70, %c0_20, %c0_21], %73 {strides = array<i32>} : memref<8x8x128xf32, #tpu.memory_space<vmem>>, vector<1x8x128xf32>,
    %c2_i32 = arith.constant 2 : i32
    %74 = arith.index_cast %c2_i32 : i32 to index
    %c0_22 = arith.constant 0 : index
    %c0_23 = arith.constant 0 : index
    %75 = vector.load %arg2[%74, %c0_22, %c0_23] : memref<8x8x512xf32, #tpu.memory_space<vmem>>, vector<1x8x512xf32>
    %76 = vector.shape_cast %75 : vector<1x8x512xf32> to vector<8x512xf32>
    %cst_24 = arith.constant dense<0.000000e+00> : vector<8x512xf32>
    %77 = tpu.matmul %69, %3, %cst_24 {dimension_numbers = #tpu.dot_dimension_numbers<[1], [0], [0], [1], [0, 0, 1, 1], [], []>} : vector<8x128xf32>, vector<128x512xf32>, vector<8x512xf32> -> vector<8x512xf32>
    %78 = arith.addf %76, %77 : vector<8x512xf32>
    %79 = vector.extract_strided_slice %78 {offsets = [0, 0], sizes = [8, 128], strides = [1, 1]} : vector<8x512xf32> to vector<8x128xf32>
    %80 = arith.negf %79 : vector<8x128xf32>
    %81 = math.exp %80 : vector<8x128xf32>
    %cst_25 = arith.constant 1.000000e+00 : f32
    %82 = vector.broadcast %cst_25 : f32 to vector<8x128xf32>
    %83 = arith.addf %82, %81 : vector<8x128xf32>
    %84 = arith.divf %82, %83 : vector<8x128xf32>
    %85 = vector.extract_strided_slice %78 {offsets = [0, 128], sizes = [8, 128], strides = [1, 1]} : vector<8x512xf32> to vector<8x128xf32>
    %86 = arith.negf %85 : vector<8x128xf32>
    %87 = math.exp %86 : vector<8x128xf32>
    %cst_26 = arith.constant 1.000000e+00 : f32
    %88 = vector.broadcast %cst_26 : f32 to vector<8x128xf32>
    %89 = arith.addf %88, %87 : vector<8x128xf32>
    %90 = arith.divf %88, %89 : vector<8x128xf32>
    %91 = vector.extract_strided_slice %78 {offsets = [0, 256], sizes = [8, 128], strides = [1, 1]} : vector<8x512xf32> to vector<8x128xf32>
    %92 = math.tanh %91 : vector<8x128xf32>
    %93 = vector.extract_strided_slice %78 {offsets = [0, 384], sizes = [8, 128], strides = [1, 1]} : vector<8x512xf32> to vector<8x128xf32>
    %94 = arith.negf %93 : vector<8x128xf32>
    %95 = math.exp %94 : vector<8x128xf32>
    %cst_27 = arith.constant 1.000000e+00 : f32
    %96 = vector.broadcast %cst_27 : f32 to vector<8x128xf32>
    %97 = arith.addf %96, %95 : vector<8x128xf32>
    %98 = arith.divf %96, %97 : vector<8x128xf32>
    %99 = arith.mulf %90, %67 : vector<8x128xf32>
    %100 = arith.mulf %84, %92 : vector<8x128xf32>
    %101 = arith.addf %99, %100 : vector<8x128xf32>
    %102 = math.tanh %101 : vector<8x128xf32>
    %103 = arith.mulf %98, %102 : vector<8x128xf32>
    %104 = arith.index_cast %c2_i32 : i32 to index
    %c0_28 = arith.constant 0 : index
    %c0_29 = arith.constant 0 : index
    %105 = vector.load %arg4[%104, %c0_28, %c0_29] : memref<8x8x128xf32, #tpu.memory_space<vmem>>, vector<1x8x128xf32>
    %106 = vector.shape_cast %105 : vector<1x8x128xf32> to vector<8x128xf32>
    %107 = vector.shape_cast %103 : vector<8x128xf32> to vector<1x8x128xf32>
    tpu.vector_store %arg4[%104, %c0_28, %c0_29], %107 {strides = array<i32>} : memref<8x8x128xf32, #tpu.memory_space<vmem>>, vector<1x8x128xf32>,
    %c3_i32 = arith.constant 3 : i32
    %108 = arith.index_cast %c3_i32 : i32 to index
    %c0_30 = arith.constant 0 : index
    %c0_31 = arith.constant 0 : index
    %109 = vector.load %arg2[%108, %c0_30, %c0_31] : memref<8x8x512xf32, #tpu.memory_space<vmem>>, vector<1x8x512xf32>
    %110 = vector.shape_cast %109 : vector<1x8x512xf32> to vector<8x512xf32>
    %cst_32 = arith.constant dense<0.000000e+00> : vector<8x512xf32>
    %111 = tpu.matmul %103, %3, %cst_32 {dimension_numbers = #tpu.dot_dimension_numbers<[1], [0], [0], [1], [0, 0, 1, 1], [], []>} : vector<8x128xf32>, vector<128x512xf32>, vector<8x512xf32> -> vector<8x512xf32>
    %112 = arith.addf %110, %111 : vector<8x512xf32>
    %113 = vector.extract_strided_slice %112 {offsets = [0, 0], sizes = [8, 128], strides = [1, 1]} : vector<8x512xf32> to vector<8x128xf32>
    %114 = arith.negf %113 : vector<8x128xf32>
    %115 = math.exp %114 : vector<8x128xf32>
    %cst_33 = arith.constant 1.000000e+00 : f32
    %116 = vector.broadcast %cst_33 : f32 to vector<8x128xf32>
    %117 = arith.addf %116, %115 : vector<8x128xf32>
    %118 = arith.divf %116, %117 : vector<8x128xf32>
    %119 = vector.extract_strided_slice %112 {offsets = [0, 128], sizes = [8, 128], strides = [1, 1]} : vector<8x512xf32> to vector<8x128xf32>
    %120 = arith.negf %119 : vector<8x128xf32>
    %121 = math.exp %120 : vector<8x128xf32>
    %cst_34 = arith.constant 1.000000e+00 : f32
    %122 = vector.broadcast %cst_34 : f32 to vector<8x128xf32>
    %123 = arith.addf %122, %121 : vector<8x128xf32>
    %124 = arith.divf %122, %123 : vector<8x128xf32>
    %125 = vector.extract_strided_slice %112 {offsets = [0, 256], sizes = [8, 128], strides = [1, 1]} : vector<8x512xf32> to vector<8x128xf32>
    %126 = math.tanh %125 : vector<8x128xf32>
    %127 = vector.extract_strided_slice %112 {offsets = [0, 384], sizes = [8, 128], strides = [1, 1]} : vector<8x512xf32> to vector<8x128xf32>
    %128 = arith.negf %127 : vector<8x128xf32>
    %129 = math.exp %128 : vector<8x128xf32>
    %cst_35 = arith.constant 1.000000e+00 : f32
    %130 = vector.broadcast %cst_35 : f32 to vector<8x128xf32>
    %131 = arith.addf %130, %129 : vector<8x128xf32>
    %132 = arith.divf %130, %131 : vector<8x128xf32>
    %133 = arith.mulf %124, %101 : vector<8x128xf32>
    %134 = arith.mulf %118, %126 : vector<8x128xf32>
    %135 = arith.addf %133, %134 : vector<8x128xf32>
    %136 = math.tanh %135 : vector<8x128xf32>
    %137 = arith.mulf %132, %136 : vector<8x128xf32>
    %138 = arith.index_cast %c3_i32 : i32 to index
    %c0_36 = arith.constant 0 : index
    %c0_37 = arith.constant 0 : index
    %139 = vector.load %arg4[%138, %c0_36, %c0_37] : memref<8x8x128xf32, #tpu.memory_space<vmem>>, vector<1x8x128xf32>
    %140 = vector.shape_cast %139 : vector<1x8x128xf32> to vector<8x128xf32>
    %141 = vector.shape_cast %137 : vector<8x128xf32> to vector<1x8x128xf32>
    tpu.vector_store %arg4[%138, %c0_36, %c0_37], %141 {strides = array<i32>} : memref<8x8x128xf32, #tpu.memory_space<vmem>>, vector<1x8x128xf32>,
    %c4_i32 = arith.constant 4 : i32
    %142 = arith.index_cast %c4_i32 : i32 to index
    %c0_38 = arith.constant 0 : index
    %c0_39 = arith.constant 0 : index
    %143 = vector.load %arg2[%142, %c0_38, %c0_39] : memref<8x8x512xf32, #tpu.memory_space<vmem>>, vector<1x8x512xf32>
    %144 = vector.shape_cast %143 : vector<1x8x512xf32> to vector<8x512xf32>
    %cst_40 = arith.constant dense<0.000000e+00> : vector<8x512xf32>
    %145 = tpu.matmul %137, %3, %cst_40 {dimension_numbers = #tpu.dot_dimension_numbers<[1], [0], [0], [1], [0, 0, 1, 1], [], []>} : vector<8x128xf32>, vector<128x512xf32>, vector<8x512xf32> -> vector<8x512xf32>
    %146 = arith.addf %144, %145 : vector<8x512xf32>
    %147 = vector.extract_strided_slice %146 {offsets = [0, 0], sizes = [8, 128], strides = [1, 1]} : vector<8x512xf32> to vector<8x128xf32>
    %148 = arith.negf %147 : vector<8x128xf32>
    %149 = math.exp %148 : vector<8x128xf32>
    %cst_41 = arith.constant 1.000000e+00 : f32
    %150 = vector.broadcast %cst_41 : f32 to vector<8x128xf32>
    %151 = arith.addf %150, %149 : vector<8x128xf32>
    %152 = arith.divf %150, %151 : vector<8x128xf32>
    %153 = vector.extract_strided_slice %146 {offsets = [0, 128], sizes = [8, 128], strides = [1, 1]} : vector<8x512xf32> to vector<8x128xf32>
    %154 = arith.negf %153 : vector<8x128xf32>
    %155 = math.exp %154 : vector<8x128xf32>
    %cst_42 = arith.constant 1.000000e+00 : f32
    %156 = vector.broadcast %cst_42 : f32 to vector<8x128xf32>
    %157 = arith.addf %156, %155 : vector<8x128xf32>
    %158 = arith.divf %156, %157 : vector<8x128xf32>
    %159 = vector.extract_strided_slice %146 {offsets = [0, 256], sizes = [8, 128], strides = [1, 1]} : vector<8x512xf32> to vector<8x128xf32>
    %160 = math.tanh %159 : vector<8x128xf32>
    %161 = vector.extract_strided_slice %146 {offsets = [0, 384], sizes = [8, 128], strides = [1, 1]} : vector<8x512xf32> to vector<8x128xf32>
    %162 = arith.negf %161 : vector<8x128xf32>
    %163 = math.exp %162 : vector<8x128xf32>
    %cst_43 = arith.constant 1.000000e+00 : f32
    %164 = vector.broadcast %cst_43 : f32 to vector<8x128xf32>
    %165 = arith.addf %164, %163 : vector<8x128xf32>
    %166 = arith.divf %164, %165 : vector<8x128xf32>
    %167 = arith.mulf %158, %135 : vector<8x128xf32>
    %168 = arith.mulf %152, %160 : vector<8x128xf32>
    %169 = arith.addf %167, %168 : vector<8x128xf32>
    %170 = math.tanh %169 : vector<8x128xf32>
    %171 = arith.mulf %166, %170 : vector<8x128xf32>
    %172 = arith.index_cast %c4_i32 : i32 to index
    %c0_44 = arith.constant 0 : index
    %c0_45 = arith.constant 0 : index
    %173 = vector.load %arg4[%172, %c0_44, %c0_45] : memref<8x8x128xf32, #tpu.memory_space<vmem>>, vector<1x8x128xf32>
    %174 = vector.shape_cast %173 : vector<1x8x128xf32> to vector<8x128xf32>
    %175 = vector.shape_cast %171 : vector<8x128xf32> to vector<1x8x128xf32>
    tpu.vector_store %arg4[%172, %c0_44, %c0_45], %175 {strides = array<i32>} : memref<8x8x128xf32, #tpu.memory_space<vmem>>, vector<1x8x128xf32>,
    %c5_i32 = arith.constant 5 : i32
    %176 = arith.index_cast %c5_i32 : i32 to index
    %c0_46 = arith.constant 0 : index
    %c0_47 = arith.constant 0 : index
    %177 = vector.load %arg2[%176, %c0_46, %c0_47] : memref<8x8x512xf32, #tpu.memory_space<vmem>>, vector<1x8x512xf32>
    %178 = vector.shape_cast %177 : vector<1x8x512xf32> to vector<8x512xf32>
    %cst_48 = arith.constant dense<0.000000e+00> : vector<8x512xf32>
    %179 = tpu.matmul %171, %3, %cst_48 {dimension_numbers = #tpu.dot_dimension_numbers<[1], [0], [0], [1], [0, 0, 1, 1], [], []>} : vector<8x128xf32>, vector<128x512xf32>, vector<8x512xf32> -> vector<8x512xf32>
    %180 = arith.addf %178, %179 : vector<8x512xf32>
    %181 = vector.extract_strided_slice %180 {offsets = [0, 0], sizes = [8, 128], strides = [1, 1]} : vector<8x512xf32> to vector<8x128xf32>
    %182 = arith.negf %181 : vector<8x128xf32>
    %183 = math.exp %182 : vector<8x128xf32>
    %cst_49 = arith.constant 1.000000e+00 : f32
    %184 = vector.broadcast %cst_49 : f32 to vector<8x128xf32>
    %185 = arith.addf %184, %183 : vector<8x128xf32>
    %186 = arith.divf %184, %185 : vector<8x128xf32>
    %187 = vector.extract_strided_slice %180 {offsets = [0, 128], sizes = [8, 128], strides = [1, 1]} : vector<8x512xf32> to vector<8x128xf32>
    %188 = arith.negf %187 : vector<8x128xf32>
    %189 = math.exp %188 : vector<8x128xf32>
    %cst_50 = arith.constant 1.000000e+00 : f32
    %190 = vector.broadcast %cst_50 : f32 to vector<8x128xf32>
    %191 = arith.addf %190, %189 : vector<8x128xf32>
    %192 = arith.divf %190, %191 : vector<8x128xf32>
    %193 = vector.extract_strided_slice %180 {offsets = [0, 256], sizes = [8, 128], strides = [1, 1]} : vector<8x512xf32> to vector<8x128xf32>
    %194 = math.tanh %193 : vector<8x128xf32>
    %195 = vector.extract_strided_slice %180 {offsets = [0, 384], sizes = [8, 128], strides = [1, 1]} : vector<8x512xf32> to vector<8x128xf32>
    %196 = arith.negf %195 : vector<8x128xf32>
    %197 = math.exp %196 : vector<8x128xf32>
    %cst_51 = arith.constant 1.000000e+00 : f32
    %198 = vector.broadcast %cst_51 : f32 to vector<8x128xf32>
    %199 = arith.addf %198, %197 : vector<8x128xf32>
    %200 = arith.divf %198, %199 : vector<8x128xf32>
    %201 = arith.mulf %192, %169 : vector<8x128xf32>
    %202 = arith.mulf %186, %194 : vector<8x128xf32>
    %203 = arith.addf %201, %202 : vector<8x128xf32>
    %204 = math.tanh %203 : vector<8x128xf32>
    %205 = arith.mulf %200, %204 : vector<8x128xf32>
    %206 = arith.index_cast %c5_i32 : i32 to index
    %c0_52 = arith.constant 0 : index
    %c0_53 = arith.constant 0 : index
    %207 = vector.load %arg4[%206, %c0_52, %c0_53] : memref<8x8x128xf32, #tpu.memory_space<vmem>>, vector<1x8x128xf32>
    %208 = vector.shape_cast %207 : vector<1x8x128xf32> to vector<8x128xf32>
    %209 = vector.shape_cast %205 : vector<8x128xf32> to vector<1x8x128xf32>
    tpu.vector_store %arg4[%206, %c0_52, %c0_53], %209 {strides = array<i32>} : memref<8x8x128xf32, #tpu.memory_space<vmem>>, vector<1x8x128xf32>,
    %c6_i32 = arith.constant 6 : i32
    %210 = arith.index_cast %c6_i32 : i32 to index
    %c0_54 = arith.constant 0 : index
    %c0_55 = arith.constant 0 : index
    %211 = vector.load %arg2[%210, %c0_54, %c0_55] : memref<8x8x512xf32, #tpu.memory_space<vmem>>, vector<1x8x512xf32>
    %212 = vector.shape_cast %211 : vector<1x8x512xf32> to vector<8x512xf32>
    %cst_56 = arith.constant dense<0.000000e+00> : vector<8x512xf32>
    %213 = tpu.matmul %205, %3, %cst_56 {dimension_numbers = #tpu.dot_dimension_numbers<[1], [0], [0], [1], [0, 0, 1, 1], [], []>} : vector<8x128xf32>, vector<128x512xf32>, vector<8x512xf32> -> vector<8x512xf32>
    %214 = arith.addf %212, %213 : vector<8x512xf32>
    %215 = vector.extract_strided_slice %214 {offsets = [0, 0], sizes = [8, 128], strides = [1, 1]} : vector<8x512xf32> to vector<8x128xf32>
    %216 = arith.negf %215 : vector<8x128xf32>
    %217 = math.exp %216 : vector<8x128xf32>
    %cst_57 = arith.constant 1.000000e+00 : f32
    %218 = vector.broadcast %cst_57 : f32 to vector<8x128xf32>
    %219 = arith.addf %218, %217 : vector<8x128xf32>
    %220 = arith.divf %218, %219 : vector<8x128xf32>
    %221 = vector.extract_strided_slice %214 {offsets = [0, 128], sizes = [8, 128], strides = [1, 1]} : vector<8x512xf32> to vector<8x128xf32>
    %222 = arith.negf %221 : vector<8x128xf32>
    %223 = math.exp %222 : vector<8x128xf32>
    %cst_58 = arith.constant 1.000000e+00 : f32
    %224 = vector.broadcast %cst_58 : f32 to vector<8x128xf32>
    %225 = arith.addf %224, %223 : vector<8x128xf32>
    %226 = arith.divf %224, %225 : vector<8x128xf32>
    %227 = vector.extract_strided_slice %214 {offsets = [0, 256], sizes = [8, 128], strides = [1, 1]} : vector<8x512xf32> to vector<8x128xf32>
    %228 = math.tanh %227 : vector<8x128xf32>
    %229 = vector.extract_strided_slice %214 {offsets = [0, 384], sizes = [8, 128], strides = [1, 1]} : vector<8x512xf32> to vector<8x128xf32>
    %230 = arith.negf %229 : vector<8x128xf32>
    %231 = math.exp %230 : vector<8x128xf32>
    %cst_59 = arith.constant 1.000000e+00 : f32
    %232 = vector.broadcast %cst_59 : f32 to vector<8x128xf32>
    %233 = arith.addf %232, %231 : vector<8x128xf32>
    %234 = arith.divf %232, %233 : vector<8x128xf32>
    %235 = arith.mulf %226, %203 : vector<8x128xf32>
    %236 = arith.mulf %220, %228 : vector<8x128xf32>
    %237 = arith.addf %235, %236 : vector<8x128xf32>
    %238 = math.tanh %237 : vector<8x128xf32>
    %239 = arith.mulf %234, %238 : vector<8x128xf32>
    %240 = arith.index_cast %c6_i32 : i32 to index
    %c0_60 = arith.constant 0 : index
    %c0_61 = arith.constant 0 : index
    %241 = vector.load %arg4[%240, %c0_60, %c0_61] : memref<8x8x128xf32, #tpu.memory_space<vmem>>, vector<1x8x128xf32>
    %242 = vector.shape_cast %241 : vector<1x8x128xf32> to vector<8x128xf32>
    %243 = vector.shape_cast %239 : vector<8x128xf32> to vector<1x8x128xf32>
    tpu.vector_store %arg4[%240, %c0_60, %c0_61], %243 {strides = array<i32>} : memref<8x8x128xf32, #tpu.memory_space<vmem>>, vector<1x8x128xf32>,
    %c7_i32 = arith.constant 7 : i32
    %244 = arith.index_cast %c7_i32 : i32 to index
    %c0_62 = arith.constant 0 : index
    %c0_63 = arith.constant 0 : index
    %245 = vector.load %arg2[%244, %c0_62, %c0_63] : memref<8x8x512xf32, #tpu.memory_space<vmem>>, vector<1x8x512xf32>
    %246 = vector.shape_cast %245 : vector<1x8x512xf32> to vector<8x512xf32>
    %cst_64 = arith.constant dense<0.000000e+00> : vector<8x512xf32>
    %247 = tpu.matmul %239, %3, %cst_64 {dimension_numbers = #tpu.dot_dimension_numbers<[1], [0], [0], [1], [0, 0, 1, 1], [], []>} : vector<8x128xf32>, vector<128x512xf32>, vector<8x512xf32> -> vector<8x512xf32>
    %248 = arith.addf %246, %247 : vector<8x512xf32>
    %249 = vector.extract_strided_slice %248 {offsets = [0, 0], sizes = [8, 128], strides = [1, 1]} : vector<8x512xf32> to vector<8x128xf32>
    %250 = arith.negf %249 : vector<8x128xf32>
    %251 = math.exp %250 : vector<8x128xf32>
    %cst_65 = arith.constant 1.000000e+00 : f32
    %252 = vector.broadcast %cst_65 : f32 to vector<8x128xf32>
    %253 = arith.addf %252, %251 : vector<8x128xf32>
    %254 = arith.divf %252, %253 : vector<8x128xf32>
    %255 = vector.extract_strided_slice %248 {offsets = [0, 128], sizes = [8, 128], strides = [1, 1]} : vector<8x512xf32> to vector<8x128xf32>
    %256 = arith.negf %255 : vector<8x128xf32>
    %257 = math.exp %256 : vector<8x128xf32>
    %cst_66 = arith.constant 1.000000e+00 : f32
    %258 = vector.broadcast %cst_66 : f32 to vector<8x128xf32>
    %259 = arith.addf %258, %257 : vector<8x128xf32>
    %260 = arith.divf %258, %259 : vector<8x128xf32>
    %261 = vector.extract_strided_slice %248 {offsets = [0, 256], sizes = [8, 128], strides = [1, 1]} : vector<8x512xf32> to vector<8x128xf32>
    %262 = math.tanh %261 : vector<8x128xf32>
    %263 = vector.extract_strided_slice %248 {offsets = [0, 384], sizes = [8, 128], strides = [1, 1]} : vector<8x512xf32> to vector<8x128xf32>
    %264 = arith.negf %263 : vector<8x128xf32>
    %265 = math.exp %264 : vector<8x128xf32>
    %cst_67 = arith.constant 1.000000e+00 : f32
    %266 = vector.broadcast %cst_67 : f32 to vector<8x128xf32>
    %267 = arith.addf %266, %265 : vector<8x128xf32>
    %268 = arith.divf %266, %267 : vector<8x128xf32>
    %269 = arith.mulf %260, %237 : vector<8x128xf32>
    %270 = arith.mulf %254, %262 : vector<8x128xf32>
    %271 = arith.addf %269, %270 : vector<8x128xf32>
    %272 = math.tanh %271 : vector<8x128xf32>
    %273 = arith.mulf %268, %272 : vector<8x128xf32>
    %274 = arith.index_cast %c7_i32 : i32 to index
    %c0_68 = arith.constant 0 : index
    %c0_69 = arith.constant 0 : index
    %275 = vector.load %arg4[%274, %c0_68, %c0_69] : memref<8x8x128xf32, #tpu.memory_space<vmem>>, vector<1x8x128xf32>
    %276 = vector.shape_cast %275 : vector<1x8x128xf32> to vector<8x128xf32>
    %277 = vector.shape_cast %273 : vector<8x128xf32> to vector<1x8x128xf32>
    tpu.vector_store %arg4[%274, %c0_68, %c0_69], %277 {strides = array<i32>} : memref<8x8x128xf32, #tpu.memory_space<vmem>>, vector<1x8x128xf32>,
    %c8_i32 = arith.constant 8 : i32
    %c0_70 = arith.constant 0 : index
    %c0_71 = arith.constant 0 : index
    %278 = vector.load %arg7[%c0_70, %c0_71] : memref<8x128xf32, #tpu.memory_space<vmem>>, vector<8x128xf32>
    tpu.vector_store %arg7[%c0_70, %c0_71], %273 {strides = array<i32>} : memref<8x128xf32, #tpu.memory_space<vmem>>, vector<8x128xf32>,
    %c0_72 = arith.constant 0 : index
    %c0_73 = arith.constant 0 : index
    %279 = vector.load %arg8[%c0_72, %c0_73] : memref<8x128xf32, #tpu.memory_space<vmem>>, vector<8x128xf32>
    tpu.vector_store %arg8[%c0_72, %c0_73], %271 {strides = array<i32>} : memref<8x128xf32, #tpu.memory_space<vmem>>, vector<8x128xf32>,
    %c0_i32_74 = arith.constant 0 : i32
    %280 = arith.cmpi eq, %arg1, %c0_i32_74 : i32
    %281 = arith.extui %280 : i1 to i32
    %c0_i32_75 = arith.constant 0 : i32
    %282 = arith.cmpi ne, %281, %c0_i32_75 : i32
    scf.if %282 {
      %c0_76 = arith.constant 0 : index
      %c0_77 = arith.constant 0 : index
      %283 = vector.load %arg5[%c0_76, %c0_77] : memref<8x128xf32, #tpu.memory_space<vmem>>, vector<8x128xf32>
      tpu.vector_store %arg5[%c0_76, %c0_77], %273 {strides = array<i32>} : memref<8x128xf32, #tpu.memory_space<vmem>>, vector<8x128xf32>,
      %c0_78 = arith.constant 0 : index
      %c0_79 = arith.constant 0 : index
      %284 = vector.load %arg6[%c0_78, %c0_79] : memref<8x128xf32, #tpu.memory_space<vmem>>, vector<8x128xf32>
      tpu.vector_store %arg6[%c0_78, %c0_79], %271 {strides = array<i32>} : memref<8x128xf32, #tpu.memory_space<vmem>>, vector<8x128xf32>,
    } else {
    }
    return
  }
  func.func @transform_0(%arg0: i32, %arg1: i32) -> (i32, i32, i32) {
    %c0_i32 = arith.constant 0 : i32
    %c0_i32_0 = arith.constant 0 : i32
    return %arg1, %arg0, %c0_i32 : i32, i32, i32
  }
  func.func @transform_1(%arg0: i32, %arg1: i32) -> (i32, i32) {
    %c0_i32 = arith.constant 0 : i32
    %c0_i32_0 = arith.constant 0 : i32
    %c0_i32_1 = arith.constant 0 : i32
    return %c0_i32, %c0_i32_0 : i32, i32
  }
  func.func @transform_2(%arg0: i32, %arg1: i32) -> (i32, i32, i32) {
    %c0_i32 = arith.constant 0 : i32
    %c0_i32_0 = arith.constant 0 : i32
    return %arg1, %arg0, %c0_i32 : i32, i32, i32
  }
  func.func @transform_3(%arg0: i32, %arg1: i32) -> (i32, i32) {
    %c0_i32 = arith.constant 0 : i32
    %c0_i32_0 = arith.constant 0 : i32
    return %arg0, %c0_i32 : i32, i32
  }
  func.func @transform_4(%arg0: i32, %arg1: i32) -> (i32, i32) {
    %c0_i32 = arith.constant 0 : i32
    %c0_i32_0 = arith.constant 0 : i32
    return %arg0, %c0_i32 : i32, i32
  }
}

</mosaic_0001>

<bundles_post_ra>
// kernel: cudnn_lstm_model_forward.1
= control target key start
LH: loop header
LB: loop body
LE: loop exit
PB: predicated region body
PF: predicated region fallthrough
CT: control target
= control target key end

     0   :  { %v2219_v3 = vmov 0.0   ;;  %s2925_s1 = inlined_call_operand.vmem [shape: f32[128,512], index: 1, kind: input, shape index: {}]   ;;  %s2926_s0 = inlined_call_operand.vmem [shape: f32[8,8,512], index: 0, kind: input, shape index: {}]   ;;  %s2927_s2 = inlined_call_operand.vmem [shape: f32[8,8,128], index: 2, kind: output, shape index: {0}]   ;;  %s2928_s4 = inlined_call_operand.vmem [shape: f32[8,128], index: 4, kind: output, shape index: {2}]   ;;  %s2929_s3 = inlined_call_operand.vmem [shape: f32[8,128], index: 3, kind: output, shape index: {1}]  }
   0x1   :  { %v21_v0 = vld [vmem:[%s2925_s1 + $0x8] sm:$0xff]  ;;  %v20_v2 = vld [vmem:[%s2925_s1] sm:$0xff]  ;;  %154 = vmatprep.mubr.f32.mxu0 %v2219_v3  ;;  %225 = vmatprep.mubr.f32.mxu1 %v2219_v3  ;;  %v23_v19 = vld [vmem:[%s2925_s1 + $0x18] sm:$0xff] }
   0x2   :  { %v25_v1 = vld [vmem:[%s2925_s1 + $0x28] sm:$0xff]  ;;  %v24_v5 = vld [vmem:[%s2925_s1 + $0x20] sm:$0xff]  ;;  %v27_v20 = vld [vmem:[%s2925_s1 + $0x38] sm:$0xff] }
   0x3   :  { %v2256_v4 = vpack.c.bf16 %v25_v1, %v21_v0  ;;  %v29_v6 = vld [vmem:[%s2925_s1 + $0x48] sm:$0xff]  ;;  %v2267_v8 = vpack.c.bf16 %v24_v5, %v20_v2  ;;  %v28_v10 = vld [vmem:[%s2925_s1 + $0x40] sm:$0xff]  ;;  %v2308_v22 = vpack.c.bf16 %v27_v20, %v23_v19  ;;  %v22_v23 = vld [vmem:[%s2925_s1 + $0x10] sm:$0xff] }
   0x4   :  { %v33_v7 = vld [vmem:[%s2925_s1 + $0x68] sm:$0xff]  ;;  %v32_v11 = vld [vmem:[%s2925_s1 + $0x60] sm:$0xff]  ;;  %v26_v24 = vld [vmem:[%s2925_s1 + $0x30] sm:$0xff] }
   0x5   :  { %v2269_v9 = vpack.c.bf16 %v33_v7, %v29_v6  ;;  %v37_v12 = vld [vmem:[%s2925_s1 + $0x88] sm:$0xff]  ;;  %1579 = vmatprep.subr.bf16.mxu0 %v2256_v4  ;;  %v2285_v14 = vpack.c.bf16 %v32_v11, %v28_v10  ;;  %v36_v15 = vld [vmem:[%s2925_s1 + $0x80] sm:$0xff]  ;;  %v2316_v25 = vpack.c.bf16 %v26_v24, %v22_v23  ;;  %1611 = vmatprep.subr.bf16.mxu1 %v2308_v22  ;;  %v31_v27 = vld [vmem:[%s2925_s1 + $0x58] sm:$0xff] }
   0x6   :  { %v41_v13 = vld [vmem:[%s2925_s1 + $0xa8] sm:$0xff]  ;;  %1581 = vmatpush1.bf16.msra.mxu0 %v2267_v8  ;;  %v40_v16 = vld [vmem:[%s2925_s1 + $0xa0] sm:$0xff]  ;;  %v35_v28 = vld [vmem:[%s2925_s1 + $0x78] sm:$0xff] }
   0x7   :  { %1583 = vmatprep.subr.bf16.mxu0 %v2269_v9  ;;  %v2294_v17 = vpack.c.bf16 %v41_v13, %v37_v12  ;;  %v45_v18 = vld [vmem:[%s2925_s1 + $0xc8] sm:$0xff]  ;;  %v2319_v26 = vpack.c.bf16 %v40_v16, %v36_v15  ;;  %v30_v29 = vld [vmem:[%s2925_s1 + $0x50] sm:$0xff]  ;;  %v44_v31 = vld [vmem:[%s2925_s1 + $0xc0] sm:$0xff]  ;;  %1613 = vmatpush1.bf16.msra.mxu1 %v2316_v25  ;;  %v2341_v33 = vpack.c.bf16 %v35_v28, %v31_v27 }
   0x8   :  { %v49_v21 = vld [vmem:[%s2925_s1 + $0xe8] sm:$0xff]  ;;  %v48_v32 = vld [vmem:[%s2925_s1 + $0xe0] sm:$0xff]  ;;  %v34_v34 = vld [vmem:[%s2925_s1 + $0x70] sm:$0xff] }
   0x9   :  { %v2332_v30 = vpack.c.bf16 %v49_v21, %v45_v18  ;;  %v53_v35 = vld [vmem:[%s2925_s1 + $0x108] sm:$0xff]  ;;  %v2352_v37 = vpack.c.bf16 %v34_v34, %v30_v29  ;;  %v39_v38 = vld [vmem:[%s2925_s1 + $0x98] sm:$0xff]  ;;  %1615 = vmatprep.subr.bf16.mxu1 %v2341_v33  ;;  %v38_v40 = vld [vmem:[%s2925_s1 + $0x90] sm:$0xff]  ;;  %v2368_v42 = vpack.c.bf16 %v48_v32, %v44_v31 }
   0xa   :  { %1585 = vmatpush1.bf16.msra.mxu0 %v2285_v14  ;;  %v57_v36 = vld [vmem:[%s2925_s1 + $0x128] sm:$0xff]  ;;  %v43_v39 = vld [vmem:[%s2925_s1 + $0xb8] sm:$0xff]  ;;  %v42_v41 = vld [vmem:[%s2925_s1 + $0xb0] sm:$0xff] }
   0xb   :  { %1587 = vmatprep.subr.bf16.mxu0 %v2294_v17  ;;  %v52_v43 = vld [vmem:[%s2925_s1 + $0x100] sm:$0xff]  ;;  %v2376_v45 = vpack.c.bf16 %v43_v39, %v39_v38  ;;  %v2379_v46 = vpack.c.bf16 %v57_v36, %v53_v35  ;;  %1617 = vmatpush1.bf16.msra.mxu1 %v2352_v37  ;;  %v61_v47 = vld [vmem:[%s2925_s1 + $0x148] sm:$0xff]  ;;  %v2385_v48 = vpack.c.bf16 %v42_v41, %v38_v40  ;;  %v47_v49 = vld [vmem:[%s2925_s1 + $0xd8] sm:$0xff] }
   0xc   :  { %v56_v44 = vld [vmem:[%s2925_s1 + $0x120] sm:$0xff]  ;;  %v51_v50 = vld [vmem:[%s2925_s1 + $0xf8] sm:$0xff]  ;;  %v65_v51 = vld [vmem:[%s2925_s1 + $0x168] sm:$0xff] }
   0xd   :  { %1619 = vmatprep.subr.bf16.mxu1 %v2376_v45  ;;  %v2397_v52 = vpack.c.bf16 %v51_v50, %v47_v49  ;;  %v46_v53 = vld [vmem:[%s2925_s1 + $0xd0] sm:$0xff]  ;;  %v2406_v55 = vpack.c.bf16 %v56_v44, %v52_v43  ;;  %v55_v56 = vld [vmem:[%s2925_s1 + $0x118] sm:$0xff]  ;;  %v2415_v58 = vpack.c.bf16 %v65_v51, %v61_v47  ;;  %v60_v59 = vld [vmem:[%s2925_s1 + $0x140] sm:$0xff] }
   0xe   :  { %1589 = vmatpush1.bf16.msra.mxu0 %v2319_v26  ;;  %v50_v54 = vld [vmem:[%s2925_s1 + $0xf0] sm:$0xff]  ;;  %v59_v57 = vld [vmem:[%s2925_s1 + $0x138] sm:$0xff]  ;;  %v64_v60 = vld [vmem:[%s2925_s1 + $0x160] sm:$0xff] }
   0xf   :  { %1591 = vmatprep.subr.bf16.mxu0 %v2332_v30  ;;  %1621 = vmatpush1.bf16.msra.mxu1 %v2385_v48  ;;  %v69_v61 = vld [vmem:[%s2925_s1 + $0x188] sm:$0xff]  ;;  %v2427_v62 = vpack.c.bf16 %v50_v54, %v46_v53  ;;  %v2433_v0 = vpack.c.bf16 %v59_v57, %v55_v56  ;;  %v54_v1 = vld [vmem:[%s2925_s1 + $0x110] sm:$0xff]  ;;  %v63_v5 = vld [vmem:[%s2925_s1 + $0x158] sm:$0xff]  ;;  %v2448_v7 = vpack.c.bf16 %v64_v60, %v60_v59 }
  0x10   :  { %v73_v63 = vld [vmem:[%s2925_s1 + $0x1a8] sm:$0xff]  ;;  %1623 = vmatprep.subr.bf16.mxu1 %v2397_v52  ;;  %v58_v2 = vld [vmem:[%s2925_s1 + $0x130] sm:$0xff]  ;;  %v67_v6 = vld [vmem:[%s2925_s1 + $0x178] sm:$0xff] }
  0x11   :  { %v2451_v10 = vpack.c.bf16 %v73_v63, %v69_v61  ;;  %v68_v11 = vld [vmem:[%s2925_s1 + $0x180] sm:$0xff]  ;;  %v77_v13 = vld [vmem:[%s2925_s1 + $0x1c8] sm:$0xff]  ;;  %v2463_v15 = vpack.c.bf16 %v58_v2, %v54_v1  ;;  %v2469_v18 = vpack.c.bf16 %v67_v6, %v63_v5  ;;  %v62_v19 = vld [vmem:[%s2925_s1 + $0x150] sm:$0xff] }
  0x12   :  { %1593 = vmatpush1.bf16.msra.mxu0 %v2368_v42  ;;  %v72_v12 = vld [vmem:[%s2925_s1 + $0x1a0] sm:$0xff]  ;;  %v81_v16 = vld [vmem:[%s2925_s1 + $0x1e8] sm:$0xff]  ;;  %v66_v20 = vld [vmem:[%s2925_s1 + $0x170] sm:$0xff] }
  0x13   :  { %1595 = vmatprep.subr.bf16.mxu0 %v2379_v46  ;;  %1625 = vmatpush1.bf16.msra.mxu1 %v2427_v62  ;;  %v71_v21 = vld [vmem:[%s2925_s1 + $0x198] sm:$0xff]  ;;  %v2484_v24 = vpack.c.bf16 %v72_v12, %v68_v11  ;;  %v2487_v27 = vpack.c.bf16 %v81_v16, %v77_v13  ;;  %v76_v28 = vld [vmem:[%s2925_s1 + $0x1c0] sm:$0xff]  ;;  %v2496_v31 = vpack.c.bf16 %v66_v20, %v62_v19  ;;  %v70_v34 = vld [vmem:[%s2925_s1 + $0x190] sm:$0xff] }
  0x14   :  { %1627 = vmatprep.subr.bf16.mxu1 %v2433_v0  ;;  %v75_v23 = vld [vmem:[%s2925_s1 + $0x1b8] sm:$0xff]  ;;  %v80_v29 = vld [vmem:[%s2925_s1 + $0x1e0] sm:$0xff]  ;;  %v74_v35 = vld [vmem:[%s2925_s1 + $0x1b0] sm:$0xff] }
  0x15   :  { %v2499_v32 = vpack.c.bf16 %v75_v23, %v71_v21  ;;  %v79_v36 = vld [vmem:[%s2925_s1 + $0x1d8] sm:$0xff]  ;;  %v2514_v39 = vpack.c.bf16 %v80_v29, %v76_v28  ;;  %v2518_v40 = vpack.c.bf16 %v74_v35, %v70_v34  ;;  %v78_v43 = vld [vmem:[%s2925_s1 + $0x1d0] sm:$0xff]  ;;  %v86_v49 = vld [vmem:[%s2926_s0] sm:$0xff] }
  0x16   :  { %1597 = vmatpush1.bf16.msra.mxu0 %v2406_v55  ;;  %v83_v38 = vld [vmem:[%s2925_s1 + $0x1f8] sm:$0xff]  ;;  %v82_v44 = vld [vmem:[%s2925_s1 + $0x1f0] sm:$0xff]  ;;  %v87_v50 = vld [vmem:[%s2926_s0 + $0x8] sm:$0xff] }
  0x17   :  { %1599 = vmatprep.subr.bf16.mxu0 %v2415_v58  ;;  %1629 = vmatpush1.bf16.msra.mxu1 %v2463_v15  ;;  %v2521_v41 = vpack.c.bf16 %v83_v38, %v79_v36  ;;  %v2531_v47 = vpack.c.bf16 %v82_v44, %v78_v43  ;;  %v89_v60 = vld [vmem:[%s2926_s0 + $0x18] sm:$0xff]  ;;  %v88_v2 = vld [vmem:[%s2926_s0 + $0x10] sm:$0xff]  ;;  %v1522_v44 = vld [vmem:[%s2926_s0 + $0x20] sm:$0xff] }
  0x18   :  { %1631 = vmatprep.subr.bf16.mxu1 %v2469_v18 }
  0x1a   :  { %1601 = vmatpush1.bf16.msra.mxu0 %v2448_v7 }
  0x1b   :  { %1603 = vmatprep.subr.bf16.mxu0 %v2451_v10  ;;  %1633 = vmatpush1.bf16.msra.mxu1 %v2496_v31 }
  0x1c   :  { %1635 = vmatprep.subr.bf16.mxu1 %v2499_v32 }
  0x1e   :  { %1605 = vmatpush1.bf16.msra.mxu0 %v2484_v24 }
  0x1f   :  { %1607 = vmatprep.subr.bf16.mxu0 %v2487_v27  ;;  %1637 = vmatpush1.bf16.msra.mxu1 %v2518_v40 }
  0x20   :  { %1639 = vmatprep.subr.bf16.mxu1 %v2521_v41 }
  0x22   :  { %1609 = vmatpush1.bf16.msra.mxu0 %v2514_v39 }
  0x23   :  { %1643 = vmatprep.subr.bf16.mxu0 %v2256_v4  ;;  %1641 = vmatpush1.bf16.msra.mxu1 %v2531_v47 }
  0x24   :  { %1675 = vmatprep.subr.bf16.mxu1 %v2308_v22 }
  0x25   :  { %155 = vmatmul.mubr.f32.vlgmr.msra.gmra.mrb[0].mxu0 %v2219_v3 }
  0x26   :  { %1645 = vmatpush1.bf16.msra.mxu0 %v2267_v8  ;;  %330 = vmatprep.mubr.f32.mxu0 %v2219_v3 }
  0x27   :  { %1647 = vmatprep.subr.bf16.mxu0 %v2269_v9  ;;  %226 = vmatmul.mubr.f32.vlgmr.msra.gmra.mrb[0].mxu1 %v2219_v3 }
  0x28   :  { %1677 = vmatpush1.bf16.msra.mxu1 %v2316_v25  ;;  %401 = vmatprep.mubr.f32.mxu1 %v2219_v3 }
  0x29   :  { %1679 = vmatprep.subr.bf16.mxu1 %v2341_v33 }
  0x2a   :  { %1649 = vmatpush1.bf16.msra.mxu0 %v2285_v14 }
  0x2b   :  { %1651 = vmatprep.subr.bf16.mxu0 %v2294_v17 }
  0x2c   :  { %1681 = vmatpush1.bf16.msra.mxu1 %v2352_v37 }
  0x2d   :  { %1683 = vmatprep.subr.bf16.mxu1 %v2376_v45 }
  0x2e   :  { %1653 = vmatpush1.bf16.msra.mxu0 %v2319_v26 }
  0x2f   :  { %1655 = vmatprep.subr.bf16.mxu0 %v2332_v30 }
  0x30   :  { %1685 = vmatpush1.bf16.msra.mxu1 %v2385_v48 }
  0x31   :  { %1687 = vmatprep.subr.bf16.mxu1 %v2397_v52 }
  0x32   :  { %1657 = vmatpush1.bf16.msra.mxu0 %v2368_v42 }
  0x33   :  { %1659 = vmatprep.subr.bf16.mxu0 %v2379_v46 }
  0x34   :  { %1689 = vmatpush1.bf16.msra.mxu1 %v2427_v62 }
  0x35   :  { %1691 = vmatprep.subr.bf16.mxu1 %v2433_v0 }
  0x36   :  { %1661 = vmatpush1.bf16.msra.mxu0 %v2406_v55 }
  0x37   :  { %1663 = vmatprep.subr.bf16.mxu0 %v2415_v58 }
  0x38   :  { %1693 = vmatpush1.bf16.msra.mxu1 %v2463_v15 }
  0x39   :  { %1695 = vmatprep.subr.bf16.mxu1 %v2469_v18 }
  0x3a   :  { %1665 = vmatpush1.bf16.msra.mxu0 %v2448_v7 }
  0x3b   :  { %1667 = vmatprep.subr.bf16.mxu0 %v2451_v10 }
  0x3c   :  { %1697 = vmatpush1.bf16.msra.mxu1 %v2496_v31 }
  0x3d   :  { %1699 = vmatprep.subr.bf16.mxu1 %v2499_v32 }
  0x3e   :  { %1669 = vmatpush1.bf16.msra.mxu0 %v2484_v24 }
  0x3f   :  { %1671 = vmatprep.subr.bf16.mxu0 %v2487_v27 }
  0x40   :  { %1701 = vmatpush1.bf16.msra.mxu1 %v2518_v40 }
  0x41   :  { %1703 = vmatprep.subr.bf16.mxu1 %v2521_v41 }
  0x42   :  { %1673 = vmatpush1.bf16.msra.mxu0 %v2514_v39 }
  0x43   :  { %1707 = vmatprep.subr.bf16.mxu0 %v2256_v4 }
  0x44   :  { %1705 = vmatpush1.bf16.msra.mxu1 %v2531_v47 }
  0x45   :  { %1739 = vmatprep.subr.bf16.mxu1 %v2308_v22 }
  0xf8   :  { %v156_v51 = vpop.f32.mrb[0].mxu0 }
  0xf9   :  { %v232_v53 = vadd.f32 %v156_v51, %v86_v49  ;;  %v158_v54 = vpop.f32.mrb[1].mxu0  ;;  %v1523_v49 = vld [vmem:[%s2926_s0 + $0x28] sm:$0xff] }
  0xfa   :  { %v233_v56 = vadd.f32 %v158_v54, %v87_v50  ;;  %v227_v61 = vpop.f32.mrb[0].mxu1 }
  0xfb   :  { %v1519_v57 = vmul.f32 -1.442695, %v232_v53  ;;  %v229_v63 = vpop.f32.mrb[1].mxu1  ;;  %v234_v6 = vadd.f32 %v227_v61, %v88_v2  ;;  %v1525_v61 = vld [vmem:[%s2926_s0 + $0x38] sm:$0xff] }
  0xfc   :  { %v1520_v59 = vmul.f32 -1.442695, %v233_v56  ;;  %v235_v1 = vadd.f32 %v229_v63, %v89_v60 }
  0xfd   :  { %2091 = vpow2.f32 %v1519_v57 }
  0xfe   :  { %2093 = vpow2.f32 %v1520_v59  ;;  %v1521_v5 = vmul.f32 -1.442695, %v235_v1  ;;  %v1524_v1 = vld [vmem:[%s2926_s0 + $0x30] sm:$0xff] }
 0x100   :  { %2095 = vpow2.f32 %v1521_v5 }
 0x101   :  { %2097 = vtanh.f32 %v234_v6 }
 0x107   :  { %v2092_v11 = vpop.eup %2091 }
 0x108   :  { %v2094_v12 = vpop.eup %2093  ;;  %v239_v13 = vadd.f32 1.0, %v2092_v11 }
 0x109   :  { %v245_v16 = vadd.f32 1.0, %v2094_v12 }
 0x10a   :  { %2099 = vrcp.f32 %v239_v13  ;;  %v2096_v19 = vpop.eup %2095 }
 0x10b   :  { %2101 = vrcp.f32 %v245_v16  ;;  %v2098_v20 = vpop.eup %2097  ;;  %v252_v23 = vadd.f32 1.0, %v2096_v19 }
 0x10d   :  { %2103 = vrcp.f32 %v252_v23 }
 0x114   :  { %v2100_v21 = vpop.eup %2099 }
 0x115   :  { %v2102_v28 = vpop.eup %2101  ;;  %v256_v29 = vmul.f32 %v2100_v21, %v2098_v20 }
 0x116   :  { %v255_v34 = vmul.f32 0.0, %v2102_v28 }
 0x117   :  { %v2104_v36 = vpop.eup %2103 }
 0x118   :  { %v2585_v35 = vadd.f32 %v256_v29, %v255_v34 }
 0x11a   :  { %2105 = vtanh.f32 %v2585_v35 }
 0x124   :  { %v2106_v38 = vpop.eup %2105 }
 0x125   :  { %v259_v43 = vmul.f32 %v2106_v38, %v2104_v36 }
 0x127   :  { %260 = vst [vmem:[%s2927_s2] sm:$0xff] %v259_v43  ;;  %331 = vmatmul.mubr.f32.vlgmr.msra.gmra.mrb[2].mxu0 %v259_v43  ;;  %402 = vmatmul.mubr.f32.vlgmr.msra.gmra.mrb[2].mxu1 %v259_v43 }
 0x128   :  { %1709 = vmatpush1.bf16.msra.mxu0 %v2267_v8  ;;  %1741 = vmatpush1.bf16.msra.mxu1 %v2316_v25 }
 0x129   :  { %1711 = vmatprep.subr.bf16.mxu0 %v2269_v9  ;;  %1743 = vmatprep.subr.bf16.mxu1 %v2341_v33 }
 0x12a   :  { %507 = vmatprep.mubr.f32.mxu0 %v2219_v3  ;;  %578 = vmatprep.mubr.f32.mxu1 %v2219_v3 }
 0x12c   :  { %1713 = vmatpush1.bf16.msra.mxu0 %v2285_v14  ;;  %1745 = vmatpush1.bf16.msra.mxu1 %v2352_v37 }
 0x12d   :  { %1715 = vmatprep.subr.bf16.mxu0 %v2294_v17  ;;  %1747 = vmatprep.subr.bf16.mxu1 %v2376_v45 }
 0x130   :  { %1717 = vmatpush1.bf16.msra.mxu0 %v2319_v26  ;;  %1749 = vmatpush1.bf16.msra.mxu1 %v2385_v48 }
 0x131   :  { %1719 = vmatprep.subr.bf16.mxu0 %v2332_v30  ;;  %1751 = vmatprep.subr.bf16.mxu1 %v2397_v52 }
 0x134   :  { %1721 = vmatpush1.bf16.msra.mxu0 %v2368_v42  ;;  %1753 = vmatpush1.bf16.msra.mxu1 %v2427_v62 }
 0x135   :  { %1723 = vmatprep.subr.bf16.mxu0 %v2379_v46  ;;  %1755 = vmatprep.subr.bf16.mxu1 %v2433_v0 }
 0x138   :  { %1725 = vmatpush1.bf16.msra.mxu0 %v2406_v55  ;;  %1757 = vmatpush1.bf16.msra.mxu1 %v2463_v15 }
 0x139   :  { %1727 = vmatprep.subr.bf16.mxu0 %v2415_v58  ;;  %1759 = vmatprep.subr.bf16.mxu1 %v2469_v18 }
 0x13c   :  { %1729 = vmatpush1.bf16.msra.mxu0 %v2448_v7  ;;  %1761 = vmatpush1.bf16.msra.mxu1 %v2496_v31 }
 0x13d   :  { %1731 = vmatprep.subr.bf16.mxu0 %v2451_v10  ;;  %1763 = vmatprep.subr.bf16.mxu1 %v2499_v32 }
 0x140   :  { %1733 = vmatpush1.bf16.msra.mxu0 %v2484_v24  ;;  %1765 = vmatpush1.bf16.msra.mxu1 %v2518_v40 }
 0x141   :  { %1735 = vmatprep.subr.bf16.mxu0 %v2487_v27  ;;  %1767 = vmatprep.subr.bf16.mxu1 %v2521_v41 }
 0x144   :  { %1737 = vmatpush1.bf16.msra.mxu0 %v2514_v39  ;;  %1769 = vmatpush1.bf16.msra.mxu1 %v2531_v47 }
 0x145   :  { %1771 = vmatprep.subr.bf16.mxu0 %v2256_v4  ;;  %1803 = vmatprep.subr.bf16.mxu1 %v2308_v22 }
 0x1fa   :  { %v332_v50 = vpop.f32.mrb[2].mxu0  ;;  %v403_v51 = vpop.f32.mrb[2].mxu1 }
 0x1fb   :  { %v408_v53 = vadd.f32 %v1522_v44, %v332_v50  ;;  %v334_v54 = vpop.f32.mrb[3].mxu0  ;;  %v405_v56 = vpop.f32.mrb[3].mxu1  ;;  %v410_v5 = vadd.f32 %v1524_v1, %v403_v51  ;;  %v1531_v44 = vld [vmem:[%s2926_s0 + $0x48] sm:$0xff] }
 0x1fc   :  { %v409_v57 = vadd.f32 %v1523_v49, %v334_v54  ;;  %v411_v63 = vadd.f32 %v1525_v61, %v405_v56 }
 0x1fd   :  { %v1526_v59 = vmul.f32 -1.442695, %v408_v53 }
 0x1fe   :  { %v1527_v60 = vmul.f32 -1.442695, %v409_v57  ;;  %v1528_v2 = vmul.f32 -1.442695, %v411_v63  ;;  %v1532_v63 = vld [vmem:[%s2926_s0 + $0x50] sm:$0xff] }
 0x1ff   :  { %2107 = vpow2.f32 %v1526_v59 }
 0x200   :  { %2109 = vpow2.f32 %v1527_v60  ;;  %v1533_v60 = vld [vmem:[%s2926_s0 + $0x58] sm:$0xff] }
 0x201   :  { %2111 = vpow2.f32 %v1528_v2 }
 0x202   :  { %2113 = vtanh.f32 %v410_v5 }
 0x209   :  { %v2108_v6 = vpop.eup %2107 }
 0x20a   :  { %v2110_v11 = vpop.eup %2109  ;;  %v415_v12 = vadd.f32 1.0, %v2108_v6 }
 0x20b   :  { %v421_v13 = vadd.f32 1.0, %v2110_v11  ;;  %v2112_v16 = vpop.eup %2111 }
 0x20c   :  { %2115 = vrcp.f32 %v415_v12  ;;  %v2114_v19 = vpop.eup %2113  ;;  %v428_v28 = vadd.f32 1.0, %v2112_v16 }
 0x20d   :  { %2117 = vrcp.f32 %v421_v13 }
 0x20e   :  { %2119 = vrcp.f32 %v428_v28 }
 0x216   :  { %v2116_v20 = vpop.eup %2115 }
 0x217   :  { %v2118_v21 = vpop.eup %2117  ;;  %v432_v23 = vmul.f32 %v2116_v20, %v2114_v19 }
 0x218   :  { %v431_v29 = vmul.f32 %v2118_v21, %v2585_v35  ;;  %v2120_v36 = vpop.eup %2119  ;;  %v1530_v35 = vld [vmem:[%s2926_s0 + $0x40] sm:$0xff] }
 0x21a   :  { %v2638_v34 = vadd.f32 %v432_v23, %v431_v29 }
 0x21c   :  { %2121 = vtanh.f32 %v2638_v34 }
 0x226   :  { %v2122_v38 = vpop.eup %2121 }
 0x227   :  { %v435_v43 = vmul.f32 %v2122_v38, %v2120_v36 }
 0x229   :  { %1529 = vst [vmem:[%s2927_s2 + $0x8] sm:$0xff] %v435_v43  ;;  %508 = vmatmul.mubr.f32.vlgmr.msra.gmra.mrb[4].mxu0 %v435_v43  ;;  %579 = vmatmul.mubr.f32.vlgmr.msra.gmra.mrb[4].mxu1 %v435_v43 }
 0x22a   :  { %1773 = vmatpush1.bf16.msra.mxu0 %v2267_v8  ;;  %1805 = vmatpush1.bf16.msra.mxu1 %v2316_v25 }
 0x22b   :  { %1775 = vmatprep.subr.bf16.mxu0 %v2269_v9  ;;  %1807 = vmatprep.subr.bf16.mxu1 %v2341_v33 }
 0x22c   :  { %684 = vmatprep.mubr.f32.mxu0 %v2219_v3  ;;  %755 = vmatprep.mubr.f32.mxu1 %v2219_v3 }
 0x22e   :  { %1777 = vmatpush1.bf16.msra.mxu0 %v2285_v14  ;;  %1809 = vmatpush1.bf16.msra.mxu1 %v2352_v37 }
 0x22f   :  { %1779 = vmatprep.subr.bf16.mxu0 %v2294_v17  ;;  %1811 = vmatprep.subr.bf16.mxu1 %v2376_v45 }
 0x232   :  { %1781 = vmatpush1.bf16.msra.mxu0 %v2319_v26  ;;  %1813 = vmatpush1.bf16.msra.mxu1 %v2385_v48 }
 0x233   :  { %1783 = vmatprep.subr.bf16.mxu0 %v2332_v30  ;;  %1815 = vmatprep.subr.bf16.mxu1 %v2397_v52 }
 0x236   :  { %1785 = vmatpush1.bf16.msra.mxu0 %v2368_v42  ;;  %1817 = vmatpush1.bf16.msra.mxu1 %v2427_v62 }
 0x237   :  { %1787 = vmatprep.subr.bf16.mxu0 %v2379_v46  ;;  %1819 = vmatprep.subr.bf16.mxu1 %v2433_v0 }
 0x23a   :  { %1789 = vmatpush1.bf16.msra.mxu0 %v2406_v55  ;;  %1821 = vmatpush1.bf16.msra.mxu1 %v2463_v15 }
 0x23b   :  { %1791 = vmatprep.subr.bf16.mxu0 %v2415_v58  ;;  %1823 = vmatprep.subr.bf16.mxu1 %v2469_v18 }
 0x23e   :  { %1793 = vmatpush1.bf16.msra.mxu0 %v2448_v7  ;;  %1825 = vmatpush1.bf16.msra.mxu1 %v2496_v31 }
 0x23f   :  { %1795 = vmatprep.subr.bf16.mxu0 %v2451_v10  ;;  %1827 = vmatprep.subr.bf16.mxu1 %v2499_v32 }
 0x242   :  { %1797 = vmatpush1.bf16.msra.mxu0 %v2484_v24  ;;  %1829 = vmatpush1.bf16.msra.mxu1 %v2518_v40 }
 0x243   :  { %1799 = vmatprep.subr.bf16.mxu0 %v2487_v27  ;;  %1831 = vmatprep.subr.bf16.mxu1 %v2521_v41 }
 0x246   :  { %1801 = vmatpush1.bf16.msra.mxu0 %v2514_v39  ;;  %1833 = vmatpush1.bf16.msra.mxu1 %v2531_v47 }
 0x247   :  { %1835 = vmatprep.subr.bf16.mxu0 %v2256_v4  ;;  %1867 = vmatprep.subr.bf16.mxu1 %v2308_v22 }
 0x2fc   :  { %v509_v49 = vpop.f32.mrb[4].mxu0  ;;  %v580_v50 = vpop.f32.mrb[4].mxu1 }
 0x2fd   :  { %v585_v51 = vadd.f32 %v1530_v35, %v509_v49  ;;  %v511_v53 = vpop.f32.mrb[5].mxu0  ;;  %v582_v54 = vpop.f32.mrb[5].mxu1  ;;  %v587_v2 = vadd.f32 %v1532_v63, %v580_v50  ;;  %v1539_v35 = vld [vmem:[%s2926_s0 + $0x68] sm:$0xff] }
 0x2fe   :  { %v586_v56 = vadd.f32 %v1531_v44, %v511_v53  ;;  %v588_v61 = vadd.f32 %v1533_v60, %v582_v54 }
 0x2ff   :  { %v1534_v57 = vmul.f32 -1.442695, %v585_v51 }
 0x300   :  { %v1535_v59 = vmul.f32 -1.442695, %v586_v56  ;;  %v1536_v1 = vmul.f32 -1.442695, %v588_v61  ;;  %v1540_v61 = vld [vmem:[%s2926_s0 + $0x70] sm:$0xff] }
 0x301   :  { %2123 = vpow2.f32 %v1534_v57 }
 0x302   :  { %2125 = vpow2.f32 %v1535_v59  ;;  %v1541_v59 = vld [vmem:[%s2926_s0 + $0x78] sm:$0xff] }
 0x303   :  { %2127 = vpow2.f32 %v1536_v1 }
 0x304   :  { %2129 = vtanh.f32 %v587_v2 }
 0x30b   :  { %v2124_v5 = vpop.eup %2123 }
 0x30c   :  { %v2126_v6 = vpop.eup %2125  ;;  %v592_v11 = vadd.f32 1.0, %v2124_v5 }
 0x30d   :  { %v598_v12 = vadd.f32 1.0, %v2126_v6  ;;  %v2128_v13 = vpop.eup %2127 }
 0x30e   :  { %2131 = vrcp.f32 %v592_v11  ;;  %v2130_v16 = vpop.eup %2129  ;;  %v605_v23 = vadd.f32 1.0, %v2128_v13 }
 0x30f   :  { %2133 = vrcp.f32 %v598_v12 }
 0x310   :  { %2135 = vrcp.f32 %v605_v23 }
 0x318   :  { %v2132_v19 = vpop.eup %2131 }
 0x319   :  { %v2134_v20 = vpop.eup %2133  ;;  %v609_v21 = vmul.f32 %v2132_v19, %v2130_v16 }
 0x31a   :  { %v608_v28 = vmul.f32 %v2134_v20, %v2638_v34  ;;  %v2136_v36 = vpop.eup %2135  ;;  %v1538_v34 = vld [vmem:[%s2926_s0 + $0x60] sm:$0xff] }
 0x31c   :  { %v2691_v29 = vadd.f32 %v609_v21, %v608_v28 }
 0x31e   :  { %2137 = vtanh.f32 %v2691_v29 }
 0x328   :  { %v2138_v38 = vpop.eup %2137 }
 0x329   :  { %v612_v43 = vmul.f32 %v2138_v38, %v2136_v36 }
 0x32b   :  { %1537 = vst [vmem:[%s2927_s2 + $0x10] sm:$0xff] %v612_v43  ;;  %685 = vmatmul.mubr.f32.vlgmr.msra.gmra.mrb[6].mxu0 %v612_v43  ;;  %756 = vmatmul.mubr.f32.vlgmr.msra.gmra.mrb[6].mxu1 %v612_v43 }
 0x32c   :  { %1837 = vmatpush1.bf16.msra.mxu0 %v2267_v8  ;;  %1869 = vmatpush1.bf16.msra.mxu1 %v2316_v25 }
 0x32d   :  { %1839 = vmatprep.subr.bf16.mxu0 %v2269_v9  ;;  %1871 = vmatprep.subr.bf16.mxu1 %v2341_v33 }
 0x32e   :  { %861 = vmatprep.mubr.f32.mxu0 %v2219_v3  ;;  %932 = vmatprep.mubr.f32.mxu1 %v2219_v3 }
 0x330   :  { %1841 = vmatpush1.bf16.msra.mxu0 %v2285_v14  ;;  %1873 = vmatpush1.bf16.msra.mxu1 %v2352_v37 }
 0x331   :  { %1843 = vmatprep.subr.bf16.mxu0 %v2294_v17  ;;  %1875 = vmatprep.subr.bf16.mxu1 %v2376_v45 }
 0x334   :  { %1845 = vmatpush1.bf16.msra.mxu0 %v2319_v26  ;;  %1877 = vmatpush1.bf16.msra.mxu1 %v2385_v48 }
 0x335   :  { %1847 = vmatprep.subr.bf16.mxu0 %v2332_v30  ;;  %1879 = vmatprep.subr.bf16.mxu1 %v2397_v52 }
 0x338   :  { %1849 = vmatpush1.bf16.msra.mxu0 %v2368_v42  ;;  %1881 = vmatpush1.bf16.msra.mxu1 %v2427_v62 }
 0x339   :  { %1851 = vmatprep.subr.bf16.mxu0 %v2379_v46  ;;  %1883 = vmatprep.subr.bf16.mxu1 %v2433_v0 }
 0x33c   :  { %1853 = vmatpush1.bf16.msra.mxu0 %v2406_v55  ;;  %1885 = vmatpush1.bf16.msra.mxu1 %v2463_v15 }
 0x33d   :  { %1855 = vmatprep.subr.bf16.mxu0 %v2415_v58  ;;  %1887 = vmatprep.subr.bf16.mxu1 %v2469_v18 }
 0x340   :  { %1857 = vmatpush1.bf16.msra.mxu0 %v2448_v7  ;;  %1889 = vmatpush1.bf16.msra.mxu1 %v2496_v31 }
 0x341   :  { %1859 = vmatprep.subr.bf16.mxu0 %v2451_v10  ;;  %1891 = vmatprep.subr.bf16.mxu1 %v2499_v32 }
 0x344   :  { %1861 = vmatpush1.bf16.msra.mxu0 %v2484_v24  ;;  %1893 = vmatpush1.bf16.msra.mxu1 %v2518_v40 }
 0x345   :  { %1863 = vmatprep.subr.bf16.mxu0 %v2487_v27  ;;  %1895 = vmatprep.subr.bf16.mxu1 %v2521_v41 }
 0x348   :  { %1865 = vmatpush1.bf16.msra.mxu0 %v2514_v39  ;;  %1897 = vmatpush1.bf16.msra.mxu1 %v2531_v47 }
 0x349   :  { %1899 = vmatprep.subr.bf16.mxu0 %v2256_v4  ;;  %1931 = vmatprep.subr.bf16.mxu1 %v2308_v22 }
 0x3fe   :  { %v686_v44 = vpop.f32.mrb[6].mxu0  ;;  %v757_v49 = vpop.f32.mrb[6].mxu1 }
 0x3ff   :  { %v762_v50 = vadd.f32 %v1538_v34, %v686_v44  ;;  %v688_v51 = vpop.f32.mrb[7].mxu0  ;;  %v759_v53 = vpop.f32.mrb[7].mxu1  ;;  %v764_v1 = vadd.f32 %v1540_v61, %v757_v49  ;;  %v1547_v34 = vld [vmem:[%s2926_s0 + $0x88] sm:$0xff] }
 0x400   :  { %v763_v54 = vadd.f32 %v1539_v35, %v688_v51  ;;  %v765_v60 = vadd.f32 %v1541_v59, %v759_v53 }
 0x401   :  { %v1542_v56 = vmul.f32 -1.442695, %v762_v50 }
 0x402   :  { %v1543_v57 = vmul.f32 -1.442695, %v763_v54  ;;  %v1544_v63 = vmul.f32 -1.442695, %v765_v60  ;;  %v1548_v60 = vld [vmem:[%s2926_s0 + $0x90] sm:$0xff] }
 0x403   :  { %2139 = vpow2.f32 %v1542_v56 }
 0x404   :  { %2141 = vpow2.f32 %v1543_v57  ;;  %v1549_v57 = vld [vmem:[%s2926_s0 + $0x98] sm:$0xff] }
 0x405   :  { %2143 = vpow2.f32 %v1544_v63 }
 0x406   :  { %2145 = vtanh.f32 %v764_v1 }
 0x40d   :  { %v2140_v2 = vpop.eup %2139 }
 0x40e   :  { %v2142_v5 = vpop.eup %2141  ;;  %v769_v6 = vadd.f32 1.0, %v2140_v2 }
 0x40f   :  { %v775_v11 = vadd.f32 1.0, %v2142_v5  ;;  %v2144_v12 = vpop.eup %2143 }
 0x410   :  { %2147 = vrcp.f32 %v769_v6  ;;  %v2146_v13 = vpop.eup %2145  ;;  %v782_v21 = vadd.f32 1.0, %v2144_v12 }
 0x411   :  { %2149 = vrcp.f32 %v775_v11 }
 0x412   :  { %2151 = vrcp.f32 %v782_v21 }
 0x41a   :  { %v2148_v16 = vpop.eup %2147 }
 0x41b   :  { %v2150_v19 = vpop.eup %2149  ;;  %v786_v20 = vmul.f32 %v2148_v16, %v2146_v13 }
 0x41c   :  { %v785_v23 = vmul.f32 %v2150_v19, %v2691_v29  ;;  %v2152_v36 = vpop.eup %2151  ;;  %v1546_v29 = vld [vmem:[%s2926_s0 + $0x80] sm:$0xff] }
 0x41e   :  { %v2744_v28 = vadd.f32 %v786_v20, %v785_v23 }
 0x420   :  { %2153 = vtanh.f32 %v2744_v28 }
 0x42a   :  { %v2154_v38 = vpop.eup %2153 }
 0x42b   :  { %v789_v43 = vmul.f32 %v2154_v38, %v2152_v36 }
 0x42d   :  { %1545 = vst [vmem:[%s2927_s2 + $0x18] sm:$0xff] %v789_v43  ;;  %862 = vmatmul.mubr.f32.vlgmr.msra.gmra.mrb[8].mxu0 %v789_v43  ;;  %933 = vmatmul.mubr.f32.vlgmr.msra.gmra.mrb[8].mxu1 %v789_v43 }
 0x42e   :  { %1901 = vmatpush1.bf16.msra.mxu0 %v2267_v8  ;;  %1933 = vmatpush1.bf16.msra.mxu1 %v2316_v25 }
 0x42f   :  { %1903 = vmatprep.subr.bf16.mxu0 %v2269_v9  ;;  %1935 = vmatprep.subr.bf16.mxu1 %v2341_v33 }
 0x430   :  { %1038 = vmatprep.mubr.f32.mxu0 %v2219_v3  ;;  %1109 = vmatprep.mubr.f32.mxu1 %v2219_v3 }
 0x432   :  { %1905 = vmatpush1.bf16.msra.mxu0 %v2285_v14  ;;  %1937 = vmatpush1.bf16.msra.mxu1 %v2352_v37 }
 0x433   :  { %1907 = vmatprep.subr.bf16.mxu0 %v2294_v17  ;;  %1939 = vmatprep.subr.bf16.mxu1 %v2376_v45 }
 0x436   :  { %1909 = vmatpush1.bf16.msra.mxu0 %v2319_v26  ;;  %1941 = vmatpush1.bf16.msra.mxu1 %v2385_v48 }
 0x437   :  { %1911 = vmatprep.subr.bf16.mxu0 %v2332_v30  ;;  %1943 = vmatprep.subr.bf16.mxu1 %v2397_v52 }
 0x43a   :  { %1913 = vmatpush1.bf16.msra.mxu0 %v2368_v42  ;;  %1945 = vmatpush1.bf16.msra.mxu1 %v2427_v62 }
 0x43b   :  { %1915 = vmatprep.subr.bf16.mxu0 %v2379_v46  ;;  %1947 = vmatprep.subr.bf16.mxu1 %v2433_v0 }
 0x43e   :  { %1917 = vmatpush1.bf16.msra.mxu0 %v2406_v55  ;;  %1949 = vmatpush1.bf16.msra.mxu1 %v2463_v15 }
 0x43f   :  { %1919 = vmatprep.subr.bf16.mxu0 %v2415_v58  ;;  %1951 = vmatprep.subr.bf16.mxu1 %v2469_v18 }
 0x442   :  { %1921 = vmatpush1.bf16.msra.mxu0 %v2448_v7  ;;  %1953 = vmatpush1.bf16.msra.mxu1 %v2496_v31 }
 0x443   :  { %1923 = vmatprep.subr.bf16.mxu0 %v2451_v10  ;;  %1955 = vmatprep.subr.bf16.mxu1 %v2499_v32 }
 0x446   :  { %1925 = vmatpush1.bf16.msra.mxu0 %v2484_v24  ;;  %1957 = vmatpush1.bf16.msra.mxu1 %v2518_v40 }
 0x447   :  { %1927 = vmatprep.subr.bf16.mxu0 %v2487_v27  ;;  %1959 = vmatprep.subr.bf16.mxu1 %v2521_v41 }
 0x44a   :  { %1929 = vmatpush1.bf16.msra.mxu0 %v2514_v39  ;;  %1961 = vmatpush1.bf16.msra.mxu1 %v2531_v47 }
 0x44b   :  { %1963 = vmatprep.subr.bf16.mxu0 %v2256_v4  ;;  %1995 = vmatprep.subr.bf16.mxu1 %v2308_v22 }
 0x500   :  { %v863_v35 = vpop.f32.mrb[8].mxu0  ;;  %v934_v44 = vpop.f32.mrb[8].mxu1 }
 0x501   :  { %v939_v49 = vadd.f32 %v1546_v29, %v863_v35  ;;  %v865_v50 = vpop.f32.mrb[9].mxu0  ;;  %v936_v51 = vpop.f32.mrb[9].mxu1  ;;  %v941_v63 = vadd.f32 %v1548_v60, %v934_v44  ;;  %v1555_v29 = vld [vmem:[%s2926_s0 + $0xa8] sm:$0xff] }
 0x502   :  { %v940_v53 = vadd.f32 %v1547_v34, %v865_v50  ;;  %v942_v59 = vadd.f32 %v1549_v57, %v936_v51 }
 0x503   :  { %v1550_v54 = vmul.f32 -1.442695, %v939_v49 }
 0x504   :  { %v1551_v56 = vmul.f32 -1.442695, %v940_v53  ;;  %v1552_v61 = vmul.f32 -1.442695, %v942_v59 }
 0x505   :  { %2155 = vpow2.f32 %v1550_v54 }
 0x506   :  { %2157 = vpow2.f32 %v1551_v56  ;;  %v1556_v56 = vld [vmem:[%s2926_s0 + $0xb0] sm:$0xff] }
 0x507   :  { %2159 = vpow2.f32 %v1552_v61 }
 0x508   :  { %2161 = vtanh.f32 %v941_v63 }
 0x50f   :  { %v2156_v1 = vpop.eup %2155 }
 0x510   :  { %v2158_v2 = vpop.eup %2157  ;;  %v946_v5 = vadd.f32 1.0, %v2156_v1 }
 0x511   :  { %v952_v6 = vadd.f32 1.0, %v2158_v2  ;;  %v2160_v11 = vpop.eup %2159 }
 0x512   :  { %2163 = vrcp.f32 %v946_v5  ;;  %v2162_v12 = vpop.eup %2161  ;;  %v959_v20 = vadd.f32 1.0, %v2160_v11 }
 0x513   :  { %2165 = vrcp.f32 %v952_v6 }
 0x514   :  { %2167 = vrcp.f32 %v959_v20 }
 0x51c   :  { %v2164_v13 = vpop.eup %2163 }
 0x51d   :  { %v2166_v16 = vpop.eup %2165  ;;  %v963_v19 = vmul.f32 %v2164_v13, %v2162_v12 }
 0x51e   :  { %v962_v21 = vmul.f32 %v2166_v16, %v2744_v28  ;;  %v2168_v36 = vpop.eup %2167  ;;  %v1554_v28 = vld [vmem:[%s2926_s0 + $0xa0] sm:$0xff] }
 0x520   :  { %v2797_v23 = vadd.f32 %v963_v19, %v962_v21 }
 0x522   :  { %2169 = vtanh.f32 %v2797_v23 }
 0x52c   :  { %v2170_v38 = vpop.eup %2169 }
 0x52d   :  { %v966_v43 = vmul.f32 %v2170_v38, %v2168_v36 }
 0x52f   :  { %1553 = vst [vmem:[%s2927_s2 + $0x20] sm:$0xff] %v966_v43  ;;  %1039 = vmatmul.mubr.f32.vlgmr.msra.gmra.mrb[10].mxu0 %v966_v43  ;;  %1110 = vmatmul.mubr.f32.vlgmr.msra.gmra.mrb[10].mxu1 %v966_v43 }
 0x530   :  { %1965 = vmatpush1.bf16.msra.mxu0 %v2267_v8  ;;  %1997 = vmatpush1.bf16.msra.mxu1 %v2316_v25 }
 0x531   :  { %1967 = vmatprep.subr.bf16.mxu0 %v2269_v9  ;;  %1999 = vmatprep.subr.bf16.mxu1 %v2341_v33 }
 0x532   :  { %1215 = vmatprep.mubr.f32.mxu0 %v2219_v3  ;;  %1286 = vmatprep.mubr.f32.mxu1 %v2219_v3 }
 0x534   :  { %1969 = vmatpush1.bf16.msra.mxu0 %v2285_v14  ;;  %2001 = vmatpush1.bf16.msra.mxu1 %v2352_v37 }
 0x535   :  { %1971 = vmatprep.subr.bf16.mxu0 %v2294_v17  ;;  %2003 = vmatprep.subr.bf16.mxu1 %v2376_v45 }
 0x538   :  { %1973 = vmatpush1.bf16.msra.mxu0 %v2319_v26  ;;  %2005 = vmatpush1.bf16.msra.mxu1 %v2385_v48 }
 0x539   :  { %1975 = vmatprep.subr.bf16.mxu0 %v2332_v30  ;;  %2007 = vmatprep.subr.bf16.mxu1 %v2397_v52 }
 0x53c   :  { %1977 = vmatpush1.bf16.msra.mxu0 %v2368_v42  ;;  %2009 = vmatpush1.bf16.msra.mxu1 %v2427_v62 }
 0x53d   :  { %1979 = vmatprep.subr.bf16.mxu0 %v2379_v46  ;;  %2011 = vmatprep.subr.bf16.mxu1 %v2433_v0 }
 0x540   :  { %1981 = vmatpush1.bf16.msra.mxu0 %v2406_v55  ;;  %2013 = vmatpush1.bf16.msra.mxu1 %v2463_v15 }
 0x541   :  { %1983 = vmatprep.subr.bf16.mxu0 %v2415_v58  ;;  %2015 = vmatprep.subr.bf16.mxu1 %v2469_v18 }
 0x544   :  { %1985 = vmatpush1.bf16.msra.mxu0 %v2448_v7  ;;  %2017 = vmatpush1.bf16.msra.mxu1 %v2496_v31 }
 0x545   :  { %1987 = vmatprep.subr.bf16.mxu0 %v2451_v10  ;;  %2019 = vmatprep.subr.bf16.mxu1 %v2499_v32 }
 0x548   :  { %1989 = vmatpush1.bf16.msra.mxu0 %v2484_v24  ;;  %2021 = vmatpush1.bf16.msra.mxu1 %v2518_v40 }
 0x549   :  { %1991 = vmatprep.subr.bf16.mxu0 %v2487_v27  ;;  %2023 = vmatprep.subr.bf16.mxu1 %v2521_v41 }
 0x54c   :  { %1993 = vmatpush1.bf16.msra.mxu0 %v2514_v39  ;;  %2025 = vmatpush1.bf16.msra.mxu1 %v2531_v47 }
 0x54d   :  { %2027 = vmatprep.subr.bf16.mxu0 %v2256_v4  ;;  %2059 = vmatprep.subr.bf16.mxu1 %v2308_v22  ;;  %v1557_v4 = vld [vmem:[%s2926_s0 + $0xb8] sm:$0xff] }
 0x602   :  { %v1040_v34 = vpop.f32.mrb[10].mxu0  ;;  %v1111_v35 = vpop.f32.mrb[10].mxu1 }
 0x603   :  { %v1116_v44 = vadd.f32 %v1554_v28, %v1040_v34  ;;  %v1042_v49 = vpop.f32.mrb[11].mxu0  ;;  %v1113_v50 = vpop.f32.mrb[11].mxu1  ;;  %v1118_v59 = vadd.f32 %v1556_v56, %v1111_v35 }
 0x604   :  { %v1117_v51 = vadd.f32 %v1555_v29, %v1042_v49  ;;  %v1119_v22 = vadd.f32 %v1557_v4, %v1113_v50  ;;  %v1573_v50 = vld [vmem:[%s2926_s0 + $0xf8] sm:$0xff] }
 0x605   :  { %v1558_v53 = vmul.f32 -1.442695, %v1116_v44 }
 0x606   :  { %v1559_v54 = vmul.f32 -1.442695, %v1117_v51  ;;  %v1560_v57 = vmul.f32 -1.442695, %v1119_v22 }
 0x607   :  { %2171 = vpow2.f32 %v1558_v53  ;;  %v1572_v53 = vld [vmem:[%s2926_s0 + $0xf0] sm:$0xff] }
 0x608   :  { %2173 = vpow2.f32 %v1559_v54 }
 0x609   :  { %2175 = vpow2.f32 %v1560_v57 }
 0x60a   :  { %2177 = vtanh.f32 %v1118_v59 }
 0x611   :  { %v2172_v60 = vpop.eup %2171 }
 0x612   :  { %v2174_v61 = vpop.eup %2173  ;;  %v1123_v63 = vadd.f32 1.0, %v2172_v60 }
 0x613   :  { %v1129_v1 = vadd.f32 1.0, %v2174_v61  ;;  %v2176_v2 = vpop.eup %2175 }
 0x614   :  { %2179 = vrcp.f32 %v1123_v63  ;;  %v2178_v5 = vpop.eup %2177  ;;  %v1136_v13 = vadd.f32 1.0, %v2176_v2 }
 0x615   :  { %2181 = vrcp.f32 %v1129_v1 }
 0x616   :  { %2183 = vrcp.f32 %v1136_v13 }
 0x61e   :  { %v2180_v6 = vpop.eup %2179 }
 0x61f   :  { %v2182_v11 = vpop.eup %2181  ;;  %v1140_v12 = vmul.f32 %v2180_v6, %v2178_v5 }
 0x620   :  { %v1139_v16 = vmul.f32 %v2182_v11, %v2797_v23  ;;  %v2184_v20 = vpop.eup %2183  ;;  %v1571_v23 = vld [vmem:[%s2926_s0 + $0xe8] sm:$0xff] }
 0x622   :  { %v2850_v19 = vadd.f32 %v1140_v12, %v1139_v16 }
 0x624   :  { %2185 = vtanh.f32 %v2850_v19 }
 0x62e   :  { %v2186_v21 = vpop.eup %2185 }
 0x62f   :  { %v1143_v36 = vmul.f32 %v2186_v21, %v2184_v20 }
 0x631   :  { %1561 = vst [vmem:[%s2927_s2 + $0x28] sm:$0xff] %v1143_v36  ;;  %1216 = vmatmul.mubr.f32.vlgmr.msra.gmra.mrb[12].mxu0 %v1143_v36  ;;  %1287 = vmatmul.mubr.f32.vlgmr.msra.gmra.mrb[12].mxu1 %v1143_v36 }
 0x632   :  { %2029 = vmatpush1.bf16.msra.mxu0 %v2267_v8  ;;  %2061 = vmatpush1.bf16.msra.mxu1 %v2316_v25  ;;  %v1563_v8 = vld [vmem:[%s2926_s0 + $0xc8] sm:$0xff] }
 0x633   :  { %2031 = vmatprep.subr.bf16.mxu0 %v2269_v9  ;;  %2063 = vmatprep.subr.bf16.mxu1 %v2341_v33 }
 0x634   :  { %1392 = vmatprep.mubr.f32.mxu0 %v2219_v3  ;;  %1463 = vmatprep.mubr.f32.mxu1 %v2219_v3  ;;  %v1562_v3 = vld [vmem:[%s2926_s0 + $0xc0] sm:$0xff] }
 0x636   :  { %2033 = vmatpush1.bf16.msra.mxu0 %v2285_v14  ;;  %2065 = vmatpush1.bf16.msra.mxu1 %v2352_v37 }
 0x637   :  { %2035 = vmatprep.subr.bf16.mxu0 %v2294_v17  ;;  %2067 = vmatprep.subr.bf16.mxu1 %v2376_v45 }
 0x63a   :  { %2037 = vmatpush1.bf16.msra.mxu0 %v2319_v26  ;;  %2069 = vmatpush1.bf16.msra.mxu1 %v2385_v48 }
 0x63b   :  { %2039 = vmatprep.subr.bf16.mxu0 %v2332_v30  ;;  %2071 = vmatprep.subr.bf16.mxu1 %v2397_v52 }
 0x63e   :  { %2041 = vmatpush1.bf16.msra.mxu0 %v2368_v42  ;;  %2073 = vmatpush1.bf16.msra.mxu1 %v2427_v62  ;;  %v1565_v42 = vld [vmem:[%s2926_s0 + $0xd8] sm:$0xff] }
 0x63f   :  { %2043 = vmatprep.subr.bf16.mxu0 %v2379_v46  ;;  %2075 = vmatprep.subr.bf16.mxu1 %v2433_v0  ;;  %v1564_v46 = vld [vmem:[%s2926_s0 + $0xd0] sm:$0xff] }
 0x642   :  { %2045 = vmatpush1.bf16.msra.mxu0 %v2406_v55  ;;  %2077 = vmatpush1.bf16.msra.mxu1 %v2463_v15 }
 0x643   :  { %2047 = vmatprep.subr.bf16.mxu0 %v2415_v58  ;;  %2079 = vmatprep.subr.bf16.mxu1 %v2469_v18 }
 0x646   :  { %2049 = vmatpush1.bf16.msra.mxu0 %v2448_v7  ;;  %2081 = vmatpush1.bf16.msra.mxu1 %v2496_v31 }
 0x647   :  { %2051 = vmatprep.subr.bf16.mxu0 %v2451_v10  ;;  %2083 = vmatprep.subr.bf16.mxu1 %v2499_v32 }
 0x64a   :  { %2053 = vmatpush1.bf16.msra.mxu0 %v2484_v24  ;;  %2085 = vmatpush1.bf16.msra.mxu1 %v2518_v40 }
 0x64b   :  { %2055 = vmatprep.subr.bf16.mxu0 %v2487_v27  ;;  %2087 = vmatprep.subr.bf16.mxu1 %v2521_v41 }
 0x64e   :  { %2057 = vmatpush1.bf16.msra.mxu0 %v2514_v39  ;;  %2089 = vmatpush1.bf16.msra.mxu1 %v2531_v47  ;;  %v1570_v47 = vld [vmem:[%s2926_s0 + $0xe0] sm:$0xff] }
 0x704   :  { %v1217_v9 = vpop.f32.mrb[12].mxu0  ;;  %v1288_v14 = vpop.f32.mrb[12].mxu1 }
 0x705   :  { %v1293_v17 = vadd.f32 %v1562_v3, %v1217_v9  ;;  %v1219_v25 = vpop.f32.mrb[13].mxu0  ;;  %v1290_v26 = vpop.f32.mrb[13].mxu1  ;;  %v1295_v52 = vadd.f32 %v1564_v46, %v1288_v14 }
 0x706   :  { %v1294_v30 = vadd.f32 %v1563_v8, %v1219_v25  ;;  %v1296_v45 = vadd.f32 %v1565_v42, %v1290_v26 }
 0x707   :  { %v1566_v33 = vmul.f32 -1.442695, %v1293_v17 }
 0x708   :  { %v1567_v37 = vmul.f32 -1.442695, %v1294_v30  ;;  %v1568_v48 = vmul.f32 -1.442695, %v1296_v45 }
 0x709   :  { %2187 = vpow2.f32 %v1566_v33 }
 0x70a   :  { %2189 = vpow2.f32 %v1567_v37 }
 0x70b   :  { %2191 = vpow2.f32 %v1568_v48 }
 0x70c   :  { %2193 = vtanh.f32 %v1295_v52 }
 0x713   :  { %v2188_v55 = vpop.eup %2187 }
 0x714   :  { %v2190_v58 = vpop.eup %2189  ;;  %v1300_v62 = vadd.f32 1.0, %v2188_v55 }
 0x715   :  { %v1306_v0 = vadd.f32 1.0, %v2190_v58  ;;  %v2192_v7 = vpop.eup %2191 }
 0x716   :  { %2195 = vrcp.f32 %v1300_v62  ;;  %v2194_v10 = vpop.eup %2193  ;;  %v1313_v27 = vadd.f32 1.0, %v2192_v7 }
 0x717   :  { %2197 = vrcp.f32 %v1306_v0 }
 0x718   :  { %2199 = vrcp.f32 %v1313_v27 }
 0x720   :  { %v2196_v15 = vpop.eup %2195 }
 0x721   :  { %v2198_v18 = vpop.eup %2197  ;;  %v1317_v24 = vmul.f32 %v2196_v15, %v2194_v10 }
 0x722   :  { %v1316_v31 = vmul.f32 %v2198_v18, %v2850_v19  ;;  %v2200_v39 = vpop.eup %2199 }
 0x724   :  { %v1318_v32 = vadd.f32 %v1317_v24, %v1316_v31 }
 0x726   :  { %2201 = vtanh.f32 %v1318_v32 }
 0x730   :  { %v2202_v40 = vpop.eup %2201 }
 0x731   :  { %v1320_v41 = vmul.f32 %v2202_v40, %v2200_v39 }
 0x733   :  { %1569 = vst [vmem:[%s2927_s2 + $0x30] sm:$0xff] %v1320_v41  ;;  %1393 = vmatmul.mubr.f32.vlgmr.msra.gmra.mrb[14].mxu0 %v1320_v41  ;;  %1464 = vmatmul.mubr.f32.vlgmr.msra.gmra.mrb[14].mxu1 %v1320_v41 }
 0x806   :  { %v1394_v38 = vpop.f32.mrb[14].mxu0  ;;  %v1465_v43 = vpop.f32.mrb[14].mxu1 }
 0x807   :  { %v1470_v28 = vadd.f32 %v1570_v47, %v1394_v38  ;;  %v1396_v29 = vpop.f32.mrb[15].mxu0  ;;  %v1467_v34 = vpop.f32.mrb[15].mxu1  ;;  %v1472_v4 = vadd.f32 %v1572_v53, %v1465_v43 }
 0x808   :  { %v1471_v35 = vadd.f32 %v1571_v23, %v1396_v29  ;;  %v1473_v51 = vadd.f32 %v1573_v50, %v1467_v34 }
 0x809   :  { %v1574_v44 = vmul.f32 -1.442695, %v1470_v28 }
 0x80a   :  { %v1575_v49 = vmul.f32 -1.442695, %v1471_v35  ;;  %v1576_v54 = vmul.f32 -1.442695, %v1473_v51 }
 0x80b   :  { %2203 = vpow2.f32 %v1574_v44 }
 0x80c   :  { %2205 = vpow2.f32 %v1575_v49 }
 0x80d   :  { %2207 = vpow2.f32 %v1576_v54 }
 0x80e   :  { %2209 = vtanh.f32 %v1472_v4 }
 0x815   :  { %v2204_v22 = vpop.eup %2203 }
 0x816   :  { %v2206_v56 = vpop.eup %2205  ;;  %v1477_v57 = vadd.f32 1.0, %v2204_v22 }
 0x817   :  { %v1483_v59 = vadd.f32 1.0, %v2206_v56  ;;  %v2208_v60 = vpop.eup %2207 }
 0x818   :  { %2211 = vrcp.f32 %v1477_v57  ;;  %v2210_v61 = vpop.eup %2209  ;;  %v1490_v5 = vadd.f32 1.0, %v2208_v60 }
 0x819   :  { %2213 = vrcp.f32 %v1483_v59 }
 0x81a   :  { %2215 = vrcp.f32 %v1490_v5 }
 0x822   :  { %v2212_v63 = vpop.eup %2211 }
 0x823   :  { %v2214_v1 = vpop.eup %2213  ;;  %v1494_v2 = vmul.f32 %v2212_v63, %v2210_v61 }
 0x824   :  { %v1493_v6 = vmul.f32 %v2214_v1, %v1318_v32  ;;  %v2216_v12 = vpop.eup %2215 }
 0x826   :  { %v1495_v11 = vadd.f32 %v1494_v2, %v1493_v6 }
 0x828   :  { %2217 = vtanh.f32 %v1495_v11  ;;  %1506 = vst [vmem:[%s2928_s4] sm:$0xff] %v1495_v11 }
 0x832   :  { %v2218_v13 = vpop.eup %2217 }
 0x833   :  { %v1497_v16 = vmul.f32 %v2218_v13, %v2216_v12 }
 0x835   :  { %1577 = vst [vmem:[%s2927_s2 + $0x38] sm:$0xff] %v1497_v16  ;;  %1505 = vst [vmem:[%s2929_s3] sm:$0xff] %v1497_v16 }

</bundles_post_ra>
